<compile_context>
chip_gen: v7x
topology: tpu7x:2x2x1
jax: 0.10.0
libtpu: 0.0.40
codegen_flags: <defaults>
</compile_context>

<pallas_src>
import functools

import jax
import jax.numpy as jnp
from jax.experimental import pallas as pl
from jax.experimental.pallas import tpu as pltpu


def _round_up(x, m):
    return ((x + m - 1) // m) * m


def _tree_attn_kernel(s_real, hid_ref, enc_ref, wh_ref, we_ref, ba_ref,
                      ws_ref, mask_ref, out_ref):
    # hid_ref : (tb, I)          goal vector block (batch tile), f32
    # enc_ref : (S_pad, tb, H)   encoder outputs, native time-major, bf16
    # wh_ref  : (I, K)           attn weight acting on the `hidden` part, f32
    # we_ref  : (H, K)           attn weight acting on the encoder part, f32
    # ba_ref  : (1, K)           attn bias, f32
    # ws_ref  : (1, K)           score weight (row vector), f32
    # mask_ref: (tb, S_pad)      int32, nonzero where position is masked
    # out_ref : (tb, S_pad)      softmax weights, lane-dense f32
    s_pad, tb, H = enc_ref.shape
    K = we_ref.shape[1]

    # Small projection with the attn bias folded in (bias added once per
    # (tb, K) row instead of once per (S_pad, tb, K) element).
    hid_proj = jnp.dot(hid_ref[...], wh_ref[...],
                       preferred_element_type=jnp.float32) + ba_ref[...]     # (tb, K)

    # One long 2-D MXU matmul with M = S_pad*tb instead of S_pad tiny batched
    # matmuls.  tb is a multiple of 8, so the f32 reshape is a layout-free
    # merge of S into the sublane axis.
    enc2d = enc_ref[...].astype(jnp.float32).reshape(s_pad * tb, H)
    enc_proj = jnp.dot(enc2d, we_ref[...],
                       preferred_element_type=jnp.float32)                    # (S_pad*tb, K)

    feat = jnp.tanh(enc_proj.reshape(s_pad, tb, K) + hid_proj[None, :, :])

    # score Linear: row-vector reduction over K.  (Score bias dropped — it is
    # a no-op under softmax.)
    energies = jnp.sum(feat * ws_ref[...][None, :, :], axis=-1)               # (S_pad, tb)
    energies = jnp.transpose(energies)                                        # (tb, S_pad)

    # masked_fill(seq_mask, -1e12); lanes beyond the real sequence length get
    # -inf so the softmax is exactly a softmax over the real S positions.
    energies = jnp.where(mask_ref[...] != 0, -1.0e12, energies)
    lane = jax.lax.broadcasted_iota(jnp.int32, energies.shape, 1)
    energies = jnp.where(lane >= s_real, -jnp.inf, energies)

    # softmax over S_pad lanes
    m = jnp.max(energies, axis=-1, keepdims=True)
    ex = jnp.exp(energies - m)
    denom = jnp.sum(ex, axis=-1, keepdims=True)
    out_ref[...] = ex * pl.reciprocal(denom, approx=True)


def _pick_batch_tile(B, S_pad, H, I, K, vmem_budget):
    """Largest multiple-of-8 batch tile whose per-grid-step VMEM footprint fits."""
    bytes_per_row = (
        2 * S_pad * H * 2        # enc block (bf16), double-buffered
        + S_pad * H * 4          # in-kernel f32 up-cast of the enc block
        + 2 * S_pad * K * 4      # enc_proj + feat f32 working set
        + 2 * S_pad * 4          # mask block (int32), double-buffered
        + 2 * S_pad * 4          # output block (f32), double-buffered
        + 2 * I * 4              # hidden block, double-buffered
    )
    fixed = 2 * ((I + H + 2) * K) * 4     # weights/bias blocks (tiny)
    tb = max(8, ((vmem_budget - fixed) // bytes_per_row) // 8 * 8)
    tb = min(tb, 256)

    b8 = _round_up(B, 8)
    tb = min(tb, b8)
    # Keep >=2 grid steps when there is enough batch so the "parallel" axis
    # can shard across both TensorCores on v7x (no effect on v5e/v6e).
    if b8 >= 16 and tb >= b8:
        tb = max(8, _round_up(b8 // 2, 8))
    return tb


def tree_attn(hidden, encoder_outputs, seq_mask, params):
    """hidden: (1,B,I) f32, encoder_outputs: (S,B,H) f32, seq_mask: (B,S) bool."""
    w_attn, b_attn, w_score = params["w_attn"], params["b_attn"], params["w_score"]
    # params["b_score"] is intentionally unused: softmax is shift-invariant.

    S, B, H = encoder_outputs.shape
    I = hidden.shape[-1]
    K = w_attn.shape[0]                                  # hidden_size

    S_pad = _round_up(S, 128)                            # lane-dense softmax/stores
    tb = _pick_batch_tile(B, S_pad, H, I, K, vmem_budget=24 << 20)
    B_pad = _round_up(B, tb)

    # Cheap glue only (no full-tensor transpose of encoder_outputs).
    hid = hidden.reshape(B, I)
    if B_pad > B:
        hid = jnp.pad(hid, ((0, B_pad - B), (0, 0)))
    enc = jnp.pad(encoder_outputs.astype(jnp.bfloat16),
                  ((0, S_pad - S), (0, B_pad - B), (0, 0)))
    mask = jnp.pad(seq_mask.astype(jnp.int32),
                   ((0, B_pad - B), (0, S_pad - S)))     # pad lanes handled in-kernel

    # nn.Linear weight is (out, in); the `in` axis is [hidden(I) ; enc(H)].
    wh = jnp.transpose(w_attn[:, :I])                    # (I, K)
    we = jnp.transpose(w_attn[:, I:])                    # (H, K)
    ba = b_attn.reshape(1, K)
    ws = w_score.reshape(1, K)

    grid = (B_pad // tb,)

    out = pl.pallas_call(
        functools.partial(_tree_attn_kernel, S),
        out_shape=jax.ShapeDtypeStruct((B_pad, S_pad), jnp.float32),
        grid=grid,
        in_specs=[
            pl.BlockSpec((tb, I), lambda i: (i, 0)),               # hidden
            pl.BlockSpec((S_pad, tb, H), lambda i: (0, i, 0)),     # enc (native S,B,H), bf16
            pl.BlockSpec((I, K), lambda i: (0, 0)),                # wh
            pl.BlockSpec((H, K), lambda i: (0, 0)),                # we
            pl.BlockSpec((1, K), lambda i: (0, 0)),                # b_attn
            pl.BlockSpec((1, K), lambda i: (0, 0)),                # w_score
            pl.BlockSpec((tb, S_pad), lambda i: (i, 0)),           # mask (int32)
        ],
        out_specs=pl.BlockSpec((tb, S_pad), lambda i: (i, 0)),
        compiler_params=pltpu.CompilerParams(
            dimension_semantics=("parallel",),
            vmem_limit_bytes=32 << 20),
    )(hid, enc, wh, we, ba, ws, mask)

    # Free slice/reshape in XLA back to the PyTorch return shape.
    return out[:B, :S].reshape(B, 1, S)


def tree_attn_reference(hidden, encoder_outputs, seq_mask, params):
    """Pure-JAX replica of the PyTorch forward, for checking."""
    w_attn, b_attn, w_score, b_score = (
        params["w_attn"], params["b_attn"], params["w_score"], params["b_score"])
    S, B, H = encoder_outputs.shape
    I = hidden.shape[-1]
    hid_rep = jnp.tile(hidden, (S, 1, 1))                         # (S, B, I)
    energy_in = jnp.concatenate([hid_rep, encoder_outputs], axis=2)
    energy_in = energy_in.reshape(-1, I + H)
    score_feature = jnp.tanh(energy_in @ w_attn.T + b_attn)
    attn_energies = (score_feature @ w_score.T + b_score)[:, 0]
    attn_energies = attn_energies.reshape(S, B).T                 # (B, S)
    attn_energies = jnp.where(seq_mask, -1.0e12, attn_energies)
    attn_energies = jax.nn.softmax(attn_energies, axis=1)
    return attn_energies[:, None, :]


if __name__ == "__main__":
    input_size = 32
    hidden_size = 32

    key = jax.random.PRNGKey(0)
    k1, k2, k3, k4 = jax.random.split(key, 4)

    # Deterministic parameter init (nn.Linear-style uniform ±1/sqrt(fan_in)).
    fan_attn = hidden_size + input_size
    params = {
        "w_attn": jax.random.uniform(k1, (hidden_size, fan_attn), jnp.float32,
                                     -fan_attn ** -0.5, fan_attn ** -0.5),
        "b_attn": jax.random.uniform(k2, (hidden_size,), jnp.float32,
                                     -fan_attn ** -0.5, fan_attn ** -0.5),
        "w_score": jax.random.uniform(k3, (1, hidden_size), jnp.float32,
                                      -hidden_size ** -0.5, hidden_size ** -0.5),
        "b_score": jax.random.uniform(k4, (1,), jnp.float32,
                                      -hidden_size ** -0.5, hidden_size ** -0.5),
    }

    # Two cases: tiny (grid=1, heavy padding) and a larger batch that
    # exercises B/S padding and a multi-step "parallel" grid.
    for (S, B) in [(8, 2), (40, 20)]:
        kk = jax.random.fold_in(key, 1000 * S + B)
        kh, ke, kl = jax.random.split(kk, 3)
        hidden = jax.random.normal(kh, (1, B, input_size), jnp.float32)
        encoder_outputs = jax.random.normal(ke, (S, B, hidden_size), jnp.float32)
        lengths = jax.random.randint(kl, (B,), 1, S + 1)
        seq_mask = jnp.arange(S)[None, :] >= lengths[:, None]      # (B, S) bool

        out = jax.block_until_ready(tree_attn(hidden, encoder_outputs, seq_mask, params))
        ref = tree_attn_reference(hidden, encoder_outputs, seq_mask, params)

        assert out.shape == (B, 1, S)
        # Tolerance accounts for the bf16 encoder feed and the EUP approximate
        # reciprocal in the softmax denominator; everything else is f32.
        assert jnp.allclose(out, ref, atol=5e-3, rtol=5e-3), f"mismatch at S={S}, B={B}"

    print("KERNEL_OK")
</pallas_src>

<mosaic_0001>
module attributes {stable_mosaic.version = 11 : i64} {
  func.func @_tree_attn_kernel(%arg0: i32, %arg1: memref<8x32xf32, #tpu.memory_space<vmem>>, %arg2: memref<128x8x32xbf16, #tpu.memory_space<vmem>>, %arg3: memref<32x32xf32, #tpu.memory_space<vmem>>, %arg4: memref<32x32xf32, #tpu.memory_space<vmem>>, %arg5: memref<1x32xf32, #tpu.memory_space<vmem>>, %arg6: memref<1x32xf32, #tpu.memory_space<vmem>>, %arg7: memref<8x128xi32, #tpu.memory_space<vmem>>, %arg8: memref<8x128xf32, #tpu.memory_space<vmem>>) attributes {dimension_semantics = [#tpu.dimension_semantics<parallel>], iteration_bounds = array<i64: 1>, scalar_prefetch = 0 : i64, scratch_operands = 0 : i64, tpu.core_type = #tpu.core_type<tc>, window_params = [{transform_indices = @transform_0, window_bounds = array<i64: 8, 32>}, {transform_indices = @transform_1, window_bounds = array<i64: 128, 8, 32>}, {pipeline_mode = #tpu.pipeline_mode<synchronous>, transform_indices = @transform_2, window_bounds = array<i64: 32, 32>}, {pipeline_mode = #tpu.pipeline_mode<synchronous>, transform_indices = @transform_3, window_bounds = array<i64: 32, 32>}, {pipeline_mode = #tpu.pipeline_mode<synchronous>, transform_indices = @transform_4, window_bounds = array<i64: 1, 32>}, {pipeline_mode = #tpu.pipeline_mode<synchronous>, transform_indices = @transform_5, window_bounds = array<i64: 1, 32>}, {transform_indices = @transform_6, window_bounds = array<i64: 8, 128>}, {transform_indices = @transform_7, window_bounds = array<i64: 8, 128>}]} {
    %c0 = arith.constant 0 : index
    %c0_0 = arith.constant 0 : index
    %0 = vector.load %arg1[%c0, %c0_0] : memref<8x32xf32, #tpu.memory_space<vmem>>, vector<8x32xf32>
    %c0_1 = arith.constant 0 : index
    %c0_2 = arith.constant 0 : index
    %1 = vector.load %arg3[%c0_1, %c0_2] : memref<32x32xf32, #tpu.memory_space<vmem>>, vector<32x32xf32>
    %cst = arith.constant dense<0.000000e+00> : vector<8x32xf32>
    %2 = tpu.matmul %0, %1, %cst {dimension_numbers = #tpu.dot_dimension_numbers<[1], [0], [0], [1], [0, 0, 1, 1], [], []>} : vector<8x32xf32>, vector<32x32xf32>, vector<8x32xf32> -> vector<8x32xf32>
    %c0_3 = arith.constant 0 : index
    %c0_4 = arith.constant 0 : index
    %3 = vector.load %arg5[%c0_3, %c0_4] : memref<1x32xf32, #tpu.memory_space<vmem>>, vector<1x32xf32>
    %4 = vector.broadcast %3 : vector<1x32xf32> to vector<8x32xf32>
    %5 = arith.addf %2, %4 : vector<8x32xf32>
    %c0_5 = arith.constant 0 : index
    %c0_6 = arith.constant 0 : index
    %c0_7 = arith.constant 0 : index
    %6 = vector.load %arg2[%c0_5, %c0_6, %c0_7] : memref<128x8x32xbf16, #tpu.memory_space<vmem>>, vector<128x8x32xbf16>
    %7 = arith.extf %6 : vector<128x8x32xbf16> to vector<128x8x32xf32>
    %8 = vector.shape_cast %7 : vector<128x8x32xf32> to vector<1024x32xf32>
    %c0_8 = arith.constant 0 : index
    %c0_9 = arith.constant 0 : index
    %9 = vector.load %arg4[%c0_8, %c0_9] : memref<32x32xf32, #tpu.memory_space<vmem>>, vector<32x32xf32>
    %cst_10 = arith.constant dense<0.000000e+00> : vector<1024x32xf32>
    %10 = tpu.matmul %8, %9, %cst_10 {dimension_numbers = #tpu.dot_dimension_numbers<[1], [0], [0], [1], [0, 0, 1, 1], [], []>} : vector<1024x32xf32>, vector<32x32xf32>, vector<1024x32xf32> -> vector<1024x32xf32>
    %11 = vector.shape_cast %10 : vector<1024x32xf32> to vector<128x8x32xf32>
    %12 = vector.shape_cast %5 : vector<8x32xf32> to vector<1x8x32xf32>
    %13 = vector.broadcast %12 : vector<1x8x32xf32> to vector<128x8x32xf32>
    %14 = arith.addf %11, %13 : vector<128x8x32xf32>
    %15 = math.tanh %14 : vector<128x8x32xf32>
    %c0_11 = arith.constant 0 : index
    %c0_12 = arith.constant 0 : index
    %16 = vector.load %arg6[%c0_11, %c0_12] : memref<1x32xf32, #tpu.memory_space<vmem>>, vector<1x32xf32>
    %17 = vector.shape_cast %16 : vector<1x32xf32> to vector<1x1x32xf32>
    %18 = vector.broadcast %17 : vector<1x1x32xf32> to vector<128x8x32xf32>
    %19 = arith.mulf %15, %18 : vector<128x8x32xf32>
    %cst_13 = arith.constant dense<0.000000e+00> : vector<128x8xf32>
    %20 = vector.multi_reduction <add>, %19, %cst_13 [2] : vector<128x8x32xf32> to vector<128x8xf32>
    %21 = tpu.transpose %20, [1, 0] : vector<128x8xf32> -> vector<8x128xf32>
    %c0_14 = arith.constant 0 : index
    %c0_15 = arith.constant 0 : index
    %22 = vector.load %arg7[%c0_14, %c0_15] : memref<8x128xi32, #tpu.memory_space<vmem>>, vector<8x128xi32>
    %c0_i32 = arith.constant 0 : i32
    %23 = vector.broadcast %c0_i32 : i32 to vector<8x128xi32>
    %24 = arith.cmpi ne, %22, %23 : vector<8x128xi32>
    %cst_16 = arith.constant -9.99999995E+11 : f32
    %25 = vector.broadcast %cst_16 : f32 to vector<8x128xf32>
    %26 = arith.select %24, %25, %21 : vector<8x128xi1>, vector<8x128xf32>
    %27 = tpu.iota {dimensions = array<i32: 1>} : vector<8x128xi32>
    %c8_i32 = arith.constant 8 : i32
    %28 = vector.broadcast %c8_i32 : i32 to vector<8x128xi32>
    %29 = arith.cmpi sge, %27, %28 : vector<8x128xi32>
    %cst_17 = arith.constant 0xFF800000 : f32
    %30 = vector.broadcast %cst_17 : f32 to vector<8x128xf32>
    %31 = arith.select %29, %30, %26 : vector<8x128xi1>, vector<8x128xf32>
    %cst_18 = arith.constant dense<0xFF800000> : vector<8xf32>
    %32 = vector.multi_reduction <maximumf>, %31, %cst_18 [1] : vector<8x128xf32> to vector<8xf32>
    %33 = vector.shape_cast %32 : vector<8xf32> to vector<8x1xf32>
    %34 = vector.broadcast %33 : vector<8x1xf32> to vector<8x128xf32>
    %35 = arith.subf %31, %34 : vector<8x128xf32>
    %36 = math.exp %35 : vector<8x128xf32>
    %cst_19 = arith.constant dense<0.000000e+00> : vector<8xf32>
    %37 = vector.multi_reduction <add>, %36, %cst_19 [1] : vector<8x128xf32> to vector<8xf32>
    %38 = vector.shape_cast %37 : vector<8xf32> to vector<8x1xf32>
    %39 = tpu.reciprocal %38 {approx = true} : vector<8x1xf32> -> vector<8x1xf32>
    %40 = vector.broadcast %39 : vector<8x1xf32> to vector<8x128xf32>
    %41 = arith.mulf %36, %40 : vector<8x128xf32>
    %c0_20 = arith.constant 0 : index
    %c0_21 = arith.constant 0 : index
    %42 = vector.load %arg8[%c0_20, %c0_21] : memref<8x128xf32, #tpu.memory_space<vmem>>, vector<8x128xf32>
    tpu.vector_store %arg8[%c0_20, %c0_21], %41 {strides = array<i32>} : memref<8x128xf32, #tpu.memory_space<vmem>>, vector<8x128xf32>,
    return
  }
  func.func @transform_0(%arg0: i32) -> (i32, i32) {
    %c0_i32 = arith.constant 0 : i32
    %c0_i32_0 = arith.constant 0 : i32
    return %arg0, %c0_i32 : i32, i32
  }
  func.func @transform_1(%arg0: i32) -> (i32, i32, i32) {
    %c0_i32 = arith.constant 0 : i32
    %c0_i32_0 = arith.constant 0 : i32
    %c0_i32_1 = arith.constant 0 : i32
    return %c0_i32, %arg0, %c0_i32_0 : i32, i32, i32
  }
  func.func @transform_2(%arg0: i32) -> (i32, i32) {
    %c0_i32 = arith.constant 0 : i32
    %c0_i32_0 = arith.constant 0 : i32
    %c0_i32_1 = arith.constant 0 : i32
    return %c0_i32, %c0_i32_0 : i32, i32
  }
  func.func @transform_3(%arg0: i32) -> (i32, i32) {
    %c0_i32 = arith.constant 0 : i32
    %c0_i32_0 = arith.constant 0 : i32
    %c0_i32_1 = arith.constant 0 : i32
    return %c0_i32, %c0_i32_0 : i32, i32
  }
  func.func @transform_4(%arg0: i32) -> (i32, i32) {
    %c0_i32 = arith.constant 0 : i32
    %c0_i32_0 = arith.constant 0 : i32
    %c0_i32_1 = arith.constant 0 : i32
    return %c0_i32, %c0_i32_0 : i32, i32
  }
  func.func @transform_5(%arg0: i32) -> (i32, i32) {
    %c0_i32 = arith.constant 0 : i32
    %c0_i32_0 = arith.constant 0 : i32
    %c0_i32_1 = arith.constant 0 : i32
    return %c0_i32, %c0_i32_0 : i32, i32
  }
  func.func @transform_6(%arg0: i32) -> (i32, i32) {
    %c0_i32 = arith.constant 0 : i32
    %c0_i32_0 = arith.constant 0 : i32
    return %arg0, %c0_i32 : i32, i32
  }
  func.func @transform_7(%arg0: i32) -> (i32, i32) {
    %c0_i32 = arith.constant 0 : i32
    %c0_i32_0 = arith.constant 0 : i32
    return %arg0, %c0_i32 : i32, i32
  }
}

</mosaic_0001>

<bundles_post_ra>
// kernel: tpu_custom_call.1
= control target key start
LH: loop header
LB: loop body
LE: loop exit
PB: predicated region body
PF: predicated region fallthrough
CT: control target
= control target key end

     0   :  { %v4180_v3 = vmov 0.0|0.0   ;;  %vm4181_vm0 = vmmov 0   ;;  %v4182_v8 = vmov 0.0   ;;  %vm39_vm1 = vcmask 261120   ;;  %s5616_s0 = inlined_call_operand.vmem [shape: f32[8,32], index: 0, kind: input, shape index: {}]   ;;  %s5617_s1 = inlined_call_operand.vmem [shape: bf16[128,8,32], index: 1, kind: input, shape index: {}]   ;;  %s5618_s2 = inlined_call_operand.vmem [shape: f32[32,32], index: 2, kind: input, shape index: {}]   ;;  %s5619_s3 = inlined_call_operand.vmem [shape: f32[32,32], index: 3, kind: input, shape index: {}]   ;;  %s5620_s4 = inlined_call_operand.vmem [shape: f32[1,32], index: 4, kind: input, shape index: {}]   ;;  %s5621_s5 = inlined_call_operand.vmem [shape: f32[1,32], index: 5, kind: input, shape index: {}]   ;;  %s5622_s6 = inlined_call_operand.vmem [shape: s32[8,128], index: 6, kind: input, shape index: {}]   ;;  %s5623_s7 = inlined_call_operand.hbm [shape: f32[8,128], index: 7, kind: output, shape index: {}]  }
   0x1   :  { %v28_v0 = vld [vmem:[%s5618_s2] sm:$0xff]  ;;  %v29_v1 = vld [vmem:[%s5618_s2 + $0x8] sm:$0xff]  ;;  %3873 = vmatprep.subr.bf16.mxu0 %v4180_v3  ;;  %v30_v6 = vld [vmem:[%s5618_s2 + $0x10] sm:$0xff]  ;;  %3670 = vmatprep.mubr.msk.f32.mxu0 %vm4181_vm0, %v4182_v8 }
   0x2   :  { %v369_v2 = vld [vmem:[%s5619_s3] sm:$0xff]  ;;  %v3874_v4 = vpack.c.bf16 %v29_v1, %v28_v0  ;;  %v370_v5 = vld [vmem:[%s5619_s3 + $0x8] sm:$0xff]  ;;  %v31_v7 = vld [vmem:[%s5618_s2 + $0x18] sm:$0xff] }
   0x3   :  { %v3879_v9 = vpack.c.bf16 %v370_v5, %v369_v2  ;;  %v371_v10 = vld [vmem:[%s5619_s3 + $0x10] sm:$0xff]  ;;  %v372_v11 = vld [vmem:[%s5619_s3 + $0x18] sm:$0xff]  ;;  %v3877_v12 = vpack.c.bf16 %v31_v7, %v30_v6  ;;  %v3207_v16 = vld [vmem:[%s5617_s1] sm:$0xff]  }
   0x4   :  { %3875 = vmatpush3.bf16.msra.mxu0 %v3874_v4  ;;  %v3883_v13 = vpack.c.bf16 %v372_v11, %v371_v10  ;;  %v3492_v14 = vld [vmem:[%s5617_s1 + $0xf8] sm:$0xff]   ;;  %v3493_v17 = vld [vmem:[%s5617_s1 + $0x100] sm:$0xff]   ;;  %v3208_v19 = vunpack.c.l.bf16 %v3207_v16  ;;  %v3494_v22 = vld [vmem:[%s5617_s1 + $0x108] sm:$0xff]   ;;  %v3209_v26 = vunpack.c.h.bf16 %v3207_v16 }
   0x5   :  { %3887 = vmatprep.subr.bf16.mxu1 %v3879_v9  ;;  %3876 = vmatprep.subr.bf16.mxu0 %v4180_v3  ;;  %v3332_v15 = vunpack.c.l.bf16 %v3492_v14  ;;  %v27_v18 = vld [vmem:[%s5616_s0] sm:$0xff]  ;;  %v3333_v20 = vunpack.c.h.bf16 %v3492_v14  ;;  %v3336_v21 = vunpack.c.l.bf16 %v3493_v17  ;;  %v3337_v23 = vunpack.c.h.bf16 %v3493_v17  ;;  %v3462_v24 = vld [vmem:[%s5617_s1 + $0x8] sm:$0xff]   ;;  %v3495_v27 = vld [vmem:[%s5617_s1 + $0x110] sm:$0xff]  }
   0x6   :  { %3889 = vmatpush3.bf16.msra.mxu1 %v3879_v9  ;;  %v3340_v25 = vunpack.c.l.bf16 %v3494_v22  ;;  %v3212_v28 = vunpack.c.l.bf16 %v3462_v24  ;;  %v3341_v29 = vunpack.c.h.bf16 %v3494_v22  ;;  %v3463_v30 = vld [vmem:[%s5617_s1 + $0x10] sm:$0xff]   ;;  %v3344_v31 = vunpack.c.l.bf16 %v3495_v27  ;;  %v3496_v33 = vld [vmem:[%s5617_s1 + $0x118] sm:$0xff]   ;;  %v3497_v39 = vld [vmem:[%s5617_s1 + $0x120] sm:$0xff]  }
   0x7   :  { %3888 = vmatprep.subr.bf16.mxu1 %v3883_v13  ;;  %3774 = vmatprep.mubr.msk.f32.mxu1 %vm39_vm1, %v3332_v15  ;;  %v3213_v32 = vunpack.c.h.bf16 %v3462_v24  ;;  %v3216_v34 = vunpack.c.l.bf16 %v3463_v30  ;;  %v3345_v35 = vunpack.c.h.bf16 %v3495_v27  ;;  %v3464_v36 = vld [vmem:[%s5617_s1 + $0x18] sm:$0xff]   ;;  %v3348_v37 = vunpack.c.l.bf16 %v3496_v33  ;;  %v3465_v42 = vld [vmem:[%s5617_s1 + $0x20] sm:$0xff]  }
   0x8   :  { %3878 = vmatpush3.bf16.msra.mxu0 %v3877_v12  ;;  %v3217_v38 = vunpack.c.h.bf16 %v3463_v30  ;;  %v3220_v40 = vunpack.c.l.bf16 %v3464_v36  ;;  %v3349_v41 = vunpack.c.h.bf16 %v3496_v33 }
   0x9   :  { %3880 = vmatprep.subr.bf16.mxu0 %v3879_v9 }
   0xa   :  { %3890 = vmatpush3.bf16.msra.mxu1 %v3883_v13 }
   0xb   :  { %3671 = vmatmul.mubr.msk.f32.vlgmr.msra.gmra.mrb[0].mxu0 %vm39_vm1, %v27_v18 }
   0xc   :  { %3882 = vmatpush3.bf16.msra.mxu0 %v3879_v9  ;;  %3681 = vmatprep.mubr.msk.f32.mxu0 %vm39_vm1, %v3208_v19 }
   0xd   :  { %3775 = vmatmul.mubr.msk.f32.vlgmr.msra.gmra.mrb[0].mxu1 %vm39_vm1, %v3333_v20  ;;  %3884 = vmatprep.subr.bf16.mxu0 %v3883_v13 }
   0xe   :  { %3777 = vmatprep.mubr.msk.f32.mxu1 %vm39_vm1, %v3336_v21 }
  0x10   :  { %3886 = vmatpush3.bf16.msra.mxu0 %v3883_v13 }
  0x11   :  { %3778 = vmatmul.mubr.msk.f32.gmra.mrb[2].mxu1 %vm39_vm1, %v3337_v23 }
  0x12   :  { %3780 = vmatprep.mubr.msk.f32.mxu1 %vm39_vm1, %v3340_v25 }
  0x13   :  { %3682 = vmatmul.mubr.msk.f32.vlgmr.msra.gmra.mrb[2].mxu0 %vm39_vm1, %v3209_v26 }
  0x14   :  { %3684 = vmatprep.mubr.msk.f32.mxu0 %vm39_vm1, %v3212_v28 }
  0x15   :  { %3781 = vmatmul.mubr.msk.f32.gmra.mrb[4].mxu1 %vm39_vm1, %v3341_v29 }
  0x16   :  { %3783 = vmatprep.mubr.msk.f32.mxu1 %vm39_vm1, %v3344_v31 }
  0x17   :  { %3685 = vmatmul.mubr.msk.f32.gmra.mrb[4].mxu0 %vm39_vm1, %v3213_v32 }
  0x18   :  { %3687 = vmatprep.mubr.msk.f32.mxu0 %vm39_vm1, %v3216_v34 }
  0x19   :  { %3784 = vmatmul.mubr.msk.f32.gmra.mrb[6].mxu1 %vm39_vm1, %v3345_v35 }
  0x1a   :  { %12 = vsyncpa [#allocation3], 0  ;;  %3786 = vmatprep.mubr.msk.f32.mxu1 %vm39_vm1, %v3348_v37  ;;  %v3352_v43 = vunpack.c.l.bf16 %v3497_v39  ;;  %v3221_v44 = vunpack.c.h.bf16 %v3464_v36  ;;  %v3498_v45 = vld [vmem:[%s5617_s1 + $0x128] sm:$0xff]   ;;  %v3224_v46 = vunpack.c.l.bf16 %v3465_v42  ;;  %v3353_v47 = vunpack.c.h.bf16 %v3497_v39  ;;  %v3499_v51 = vld [vmem:[%s5617_s1 + $0x130] sm:$0xff]   ;;  %s4183_s20 = smov [#allocation2]  }
  0x1b   :  { %3688 = vmatmul.mubr.msk.f32.gmra.mrb[6].mxu0 %vm39_vm1, %v3217_v38  ;;  %v3466_v48 = vld [vmem:[%s5617_s1 + $0x28] sm:$0xff]   ;;  %v3356_v49 = vunpack.c.l.bf16 %v3498_v45  ;;  %v3225_v50 = vunpack.c.h.bf16 %v3465_v42  ;;  %v3357_v53 = vunpack.c.h.bf16 %v3498_v45  ;;  %v3467_v54 = vld [vmem:[%s5617_s1 + $0x30] sm:$0xff]   ;;  %v3360_v55 = vunpack.c.l.bf16 %v3499_v51  ;;  %v3500_v57 = vld [vmem:[%s5617_s1 + $0x138] sm:$0xff]   ;;  %s3067_s21 = sshll.u32 %s4183_s20, 4  ;;  %s3068_s21 = int_to_ptr.vmem [resolvable:$true] %s3067_s21 }
  0x1c   :  { %3690 = vmatprep.mubr.msk.f32.mxu0 %vm39_vm1, %v3220_v40  ;;  %v3228_v52 = vunpack.c.l.bf16 %v3466_v48  ;;  %v3229_v56 = vunpack.c.h.bf16 %v3466_v48  ;;  %v3232_v58 = vunpack.c.l.bf16 %v3467_v54  ;;  %v3361_v59 = vunpack.c.h.bf16 %v3499_v51  ;;  %v3468_v60 = vld [vmem:[%s5617_s1 + $0x38] sm:$0xff]   ;;  %v3501_v63 = vld [vmem:[%s5617_s1 + $0x140] sm:$0xff]   ;;  %v3502_v5 = vld [vmem:[%s5617_s1 + $0x148] sm:$0xff]   ;;  %p4161_p1 = scmp.lt.s32.totalorder %s3068_s21, %s3068_s21 }
  0x1d   :  { %3787 = vmatmul.mubr.msk.f32.gmra.mrb[8].mxu1 %vm39_vm1, %v3349_v41  ;;  %v3364_v61 = vunpack.c.l.bf16 %v3500_v57  ;;  %v3233_v62 = vunpack.c.h.bf16 %v3467_v54  ;;  %v3236_v0 = vunpack.c.l.bf16 %v3468_v60  ;;  %v3365_v1 = vunpack.c.h.bf16 %v3500_v57  ;;  %v3469_v2 = vld [vmem:[%s5617_s1 + $0x40] sm:$0xff]   ;;  %v3470_v8 = vld [vmem:[%s5617_s1 + $0x48] sm:$0xff]   ;;  %v3503_v11 = vld [vmem:[%s5617_s1 + $0x150] sm:$0xff]  }
  0x1e   :  { %3789 = vmatprep.mubr.msk.f32.mxu1 %vm39_vm1, %v3352_v43  ;;  %v3368_v3 = vunpack.c.l.bf16 %v3501_v63  ;;  %v3237_v4 = vunpack.c.h.bf16 %v3468_v60  ;;  %v3240_v6 = vunpack.c.l.bf16 %v3469_v2  ;;  %v3369_v7 = vunpack.c.h.bf16 %v3501_v63  ;;  %v3471_v14 = vld [vmem:[%s5617_s1 + $0x50] sm:$0xff]   ;;  %v3504_v17 = vld [vmem:[%s5617_s1 + $0x158] sm:$0xff]   ;;  %v3505_v23 = vld [vmem:[%s5617_s1 + $0x160] sm:$0xff]  }
  0x1f   :  { %3691 = vmatmul.mubr.msk.f32.gmra.mrb[8].mxu0 %vm39_vm1, %v3221_v44  ;;  %v3372_v9 = vunpack.c.l.bf16 %v3502_v5  ;;  %v3241_v10 = vunpack.c.h.bf16 %v3469_v2  ;;  %v3244_v12 = vunpack.c.l.bf16 %v3470_v8  ;;  %v3373_v13 = vunpack.c.h.bf16 %v3502_v5  ;;  %v3472_v20 = vld [vmem:[%s5617_s1 + $0x58] sm:$0xff]   ;;  %v3473_v26 = vld [vmem:[%s5617_s1 + $0x60] sm:$0xff]   ;;  %v3506_v29 = vld [vmem:[%s5617_s1 + $0x168] sm:$0xff]  }
  0x20   :  { %3693 = vmatprep.mubr.msk.f32.mxu0 %vm39_vm1, %v3224_v46  ;;  %v3376_v15 = vunpack.c.l.bf16 %v3503_v11  ;;  %v3245_v16 = vunpack.c.h.bf16 %v3470_v8  ;;  %v3248_v18 = vunpack.c.l.bf16 %v3471_v14  ;;  %v3377_v19 = vunpack.c.h.bf16 %v3503_v11  ;;  %v3474_v32 = vld [vmem:[%s5617_s1 + $0x68] sm:$0xff]   ;;  %v3507_v35 = vld [vmem:[%s5617_s1 + $0x170] sm:$0xff]   ;;  %v3508_v41 = vld [vmem:[%s5617_s1 + $0x178] sm:$0xff]  }
  0x21   :  { %3790 = vmatmul.mubr.msk.f32.gmra.mrb[10].mxu1 %vm39_vm1, %v3353_v47  ;;  %v3380_v21 = vunpack.c.l.bf16 %v3504_v17  ;;  %v3249_v22 = vunpack.c.h.bf16 %v3471_v14  ;;  %v3252_v24 = vunpack.c.l.bf16 %v3472_v20  ;;  %v3381_v25 = vunpack.c.h.bf16 %v3504_v17  ;;  %v3475_v38 = vld [vmem:[%s5617_s1 + $0x70] sm:$0xff]   ;;  %v3476_v44 = vld [vmem:[%s5617_s1 + $0x78] sm:$0xff]   ;;  %v3509_v47 = vld [vmem:[%s5617_s1 + $0x180] sm:$0xff]  }
  0x22   :  { %3792 = vmatprep.mubr.msk.f32.mxu1 %vm39_vm1, %v3356_v49  ;;  %v3384_v27 = vunpack.c.l.bf16 %v3505_v23  ;;  %v3253_v28 = vunpack.c.h.bf16 %v3472_v20  ;;  %v3256_v30 = vunpack.c.l.bf16 %v3473_v26  ;;  %v3385_v31 = vunpack.c.h.bf16 %v3505_v23 }
  0x23   :  { %3694 = vmatmul.mubr.msk.f32.gmra.mrb[10].mxu0 %vm39_vm1, %v3225_v50  ;;  %v3388_v33 = vunpack.c.l.bf16 %v3506_v29  ;;  %v3257_v34 = vunpack.c.h.bf16 %v3473_v26  ;;  %v3260_v36 = vunpack.c.l.bf16 %v3474_v32  ;;  %v3389_v37 = vunpack.c.h.bf16 %v3506_v29  ;;  %v3477_v50 = vld [vmem:[%s5617_s1 + $0x80] sm:$0xff]  }
  0x24   :  { %3696 = vmatprep.mubr.msk.f32.mxu0 %vm39_vm1, %v3228_v52  ;;  %v3392_v39 = vunpack.c.l.bf16 %v3507_v35  ;;  %v3261_v40 = vunpack.c.h.bf16 %v3474_v32  ;;  %v3264_v42 = vunpack.c.l.bf16 %v3475_v38  ;;  %v3393_v43 = vunpack.c.h.bf16 %v3507_v35 }
  0x25   :  { %3793 = vmatmul.mubr.msk.f32.gmra.mrb[12].mxu1 %vm39_vm1, %v3357_v53  ;;  %v3396_v45 = vunpack.c.l.bf16 %v3508_v41  ;;  %v3265_v46 = vunpack.c.h.bf16 %v3475_v38  ;;  %v3268_v48 = vunpack.c.l.bf16 %v3476_v44  ;;  %v3397_v49 = vunpack.c.h.bf16 %v3508_v41  ;;  %v3510_v53 = vld [vmem:[%s5617_s1 + $0x188] sm:$0xff]  }
  0x26   :  { %3795 = vmatprep.mubr.msk.f32.mxu1 %vm39_vm1, %v3360_v55  ;;  %v3400_v51 = vunpack.c.l.bf16 %v3509_v47  ;;  %v3269_v52 = vunpack.c.h.bf16 %v3476_v44  ;;  %v3272_v54 = vunpack.c.l.bf16 %v3477_v50  ;;  %v3401_v55 = vunpack.c.h.bf16 %v3509_v47 }
  0x27   :  { %3697 = vmatmul.mubr.msk.f32.gmra.mrb[12].mxu0 %vm39_vm1, %v3229_v56  ;;  %v3478_v56 = vld [vmem:[%s5617_s1 + $0x88] sm:$0xff]   ;;  %v3404_v57 = vunpack.c.l.bf16 %v3510_v53  ;;  %vm2879_vm2 = vcmask 1041409   ;;  %vm2881_vm3 = vcmask 1042434   ;;  %vm2883_vm4 = vcmask 1043459  }
  0x28   :  { %3699 = vmatprep.mubr.msk.f32.mxu0 %vm39_vm1, %v3232_v58  ;;  %v3273_v58 = vunpack.c.h.bf16 %v3477_v50  ;;  %v3276_v60 = vunpack.c.l.bf16 %v3478_v56  ;;  %vm2885_vm5 = vcmask 1044484   ;;  %vm2887_vm6 = vcmask 1045509  }
  0x29   :  { %3796 = vmatmul.mubr.msk.f32.gmra.mrb[14].mxu1 %vm39_vm1, %v3361_v59  ;;  %v3511_v59 = vld [vmem:[%s5617_s1 + $0x190] sm:$0xff]   ;;  %vm2889_vm7 = vcmask 1046534   ;;  %vm2891_vm8 = vcmask 1047559  }
  0x2a   :  { %3798 = vmatprep.mubr.msk.f32.mxu1 %vm39_vm1, %v3364_v61  ;;  %v3405_v61 = vunpack.c.h.bf16 %v3510_v53  ;;  %v3408_v63 = vunpack.c.l.bf16 %v3511_v59 }
  0x2b   :  { %3700 = vmatmul.mubr.msk.f32.gmra.mrb[14].mxu0 %vm39_vm1, %v3233_v62  ;;  %v3479_v62 = vld [vmem:[%s5617_s1 + $0x90] sm:$0xff]  }
  0x2c   :  { %3702 = vmatprep.mubr.msk.f32.mxu0 %vm39_vm1, %v3236_v0  ;;  %v3277_v0 = vunpack.c.h.bf16 %v3478_v56  ;;  %v3280_v2 = vunpack.c.l.bf16 %v3479_v62 }
  0x2d   :  { %3799 = vmatmul.mubr.msk.f32.gmra.mrb[16].mxu1 %vm39_vm1, %v3365_v1  ;;  %v3512_v1 = vld [vmem:[%s5617_s1 + $0x198] sm:$0xff]  }
  0x2e   :  { %3801 = vmatprep.mubr.msk.f32.mxu1 %vm39_vm1, %v3368_v3  ;;  %v3409_v3 = vunpack.c.h.bf16 %v3511_v59  ;;  %v3412_v5 = vunpack.c.l.bf16 %v3512_v1 }
  0x2f   :  { %3703 = vmatmul.mubr.msk.f32.gmra.mrb[16].mxu0 %vm39_vm1, %v3237_v4  ;;  %v3480_v4 = vld [vmem:[%s5617_s1 + $0x98] sm:$0xff]  }
  0x30   :  { %3705 = vmatprep.mubr.msk.f32.mxu0 %vm39_vm1, %v3240_v6  ;;  %v3281_v6 = vunpack.c.h.bf16 %v3479_v62  ;;  %v3284_v8 = vunpack.c.l.bf16 %v3480_v4 }
  0x31   :  { %3802 = vmatmul.mubr.msk.f32.gmra.mrb[18].mxu1 %vm39_vm1, %v3369_v7  ;;  %v3513_v7 = vld [vmem:[%s5617_s1 + $0x1a0] sm:$0xff]  }
  0x32   :  { %3804 = vmatprep.mubr.msk.f32.mxu1 %vm39_vm1, %v3372_v9  ;;  %v3413_v9 = vunpack.c.h.bf16 %v3512_v1  ;;  %v3416_v11 = vunpack.c.l.bf16 %v3513_v7 }
  0x33   :  { %3706 = vmatmul.mubr.msk.f32.gmra.mrb[18].mxu0 %vm39_vm1, %v3241_v10  ;;  %v3481_v10 = vld [vmem:[%s5617_s1 + $0xa0] sm:$0xff]  }
  0x34   :  { %3708 = vmatprep.mubr.msk.f32.mxu0 %vm39_vm1, %v3244_v12  ;;  %v3285_v12 = vunpack.c.h.bf16 %v3480_v4  ;;  %v3288_v14 = vunpack.c.l.bf16 %v3481_v10 }
  0x35   :  { %3805 = vmatmul.mubr.msk.f32.gmra.mrb[20].mxu1 %vm39_vm1, %v3373_v13  ;;  %v3514_v13 = vld [vmem:[%s5617_s1 + $0x1a8] sm:$0xff]  }
  0x36   :  { %3807 = vmatprep.mubr.msk.f32.mxu1 %vm39_vm1, %v3376_v15  ;;  %v3417_v15 = vunpack.c.h.bf16 %v3513_v7  ;;  %v3420_v17 = vunpack.c.l.bf16 %v3514_v13 }
  0x37   :  { %3709 = vmatmul.mubr.msk.f32.gmra.mrb[20].mxu0 %vm39_vm1, %v3245_v16  ;;  %v3482_v16 = vld [vmem:[%s5617_s1 + $0xa8] sm:$0xff]  }
  0x38   :  { %3711 = vmatprep.mubr.msk.f32.mxu0 %vm39_vm1, %v3248_v18  ;;  %v3289_v18 = vunpack.c.h.bf16 %v3481_v10  ;;  %v3292_v20 = vunpack.c.l.bf16 %v3482_v16 }
  0x39   :  { %3808 = vmatmul.mubr.msk.f32.gmra.mrb[22].mxu1 %vm39_vm1, %v3377_v19  ;;  %v3515_v19 = vld [vmem:[%s5617_s1 + $0x1b0] sm:$0xff]  }
  0x3a   :  { %3810 = vmatprep.mubr.msk.f32.mxu1 %vm39_vm1, %v3380_v21  ;;  %v3421_v21 = vunpack.c.h.bf16 %v3514_v13  ;;  %v3424_v23 = vunpack.c.l.bf16 %v3515_v19 }
  0x3b   :  { %3712 = vmatmul.mubr.msk.f32.gmra.mrb[22].mxu0 %vm39_vm1, %v3249_v22  ;;  %v3483_v22 = vld [vmem:[%s5617_s1 + $0xb0] sm:$0xff]  }
  0x3c   :  { %3714 = vmatprep.mubr.msk.f32.mxu0 %vm39_vm1, %v3252_v24  ;;  %v3293_v24 = vunpack.c.h.bf16 %v3482_v16  ;;  %v3296_v26 = vunpack.c.l.bf16 %v3483_v22 }
  0x3d   :  { %3811 = vmatmul.mubr.msk.f32.gmra.mrb[24].mxu1 %vm39_vm1, %v3381_v25  ;;  %v3516_v25 = vld [vmem:[%s5617_s1 + $0x1b8] sm:$0xff]  }
  0x3e   :  { %3813 = vmatprep.mubr.msk.f32.mxu1 %vm39_vm1, %v3384_v27  ;;  %v3425_v27 = vunpack.c.h.bf16 %v3515_v19  ;;  %v3428_v29 = vunpack.c.l.bf16 %v3516_v25 }
  0x3f   :  { %3715 = vmatmul.mubr.msk.f32.gmra.mrb[24].mxu0 %vm39_vm1, %v3253_v28  ;;  %v3484_v28 = vld [vmem:[%s5617_s1 + $0xb8] sm:$0xff]  }
  0x40   :  { %3717 = vmatprep.mubr.msk.f32.mxu0 %vm39_vm1, %v3256_v30  ;;  %v3297_v30 = vunpack.c.h.bf16 %v3483_v22  ;;  %v3300_v32 = vunpack.c.l.bf16 %v3484_v28 }
  0x41   :  { %3814 = vmatmul.mubr.msk.f32.gmra.mrb[26].mxu1 %vm39_vm1, %v3385_v31  ;;  %v3517_v31 = vld [vmem:[%s5617_s1 + $0x1c0] sm:$0xff]  }
  0x42   :  { %3816 = vmatprep.mubr.msk.f32.mxu1 %vm39_vm1, %v3388_v33  ;;  %v3429_v33 = vunpack.c.h.bf16 %v3516_v25  ;;  %v3432_v35 = vunpack.c.l.bf16 %v3517_v31 }
  0x43   :  { %3718 = vmatmul.mubr.msk.f32.gmra.mrb[26].mxu0 %vm39_vm1, %v3257_v34  ;;  %v3485_v34 = vld [vmem:[%s5617_s1 + $0xc0] sm:$0xff]  }
  0x44   :  { %3720 = vmatprep.mubr.msk.f32.mxu0 %vm39_vm1, %v3260_v36  ;;  %v3301_v36 = vunpack.c.h.bf16 %v3484_v28  ;;  %v3304_v38 = vunpack.c.l.bf16 %v3485_v34 }
  0x45   :  { %3817 = vmatmul.mubr.msk.f32.gmra.mrb[28].mxu1 %vm39_vm1, %v3389_v37  ;;  %v3518_v37 = vld [vmem:[%s5617_s1 + $0x1c8] sm:$0xff]  }
  0x46   :  { %3819 = vmatprep.mubr.msk.f32.mxu1 %vm39_vm1, %v3392_v39  ;;  %v3433_v39 = vunpack.c.h.bf16 %v3517_v31  ;;  %v3436_v41 = vunpack.c.l.bf16 %v3518_v37 }
  0x47   :  { %3721 = vmatmul.mubr.msk.f32.gmra.mrb[28].mxu0 %vm39_vm1, %v3261_v40  ;;  %v3486_v40 = vld [vmem:[%s5617_s1 + $0xc8] sm:$0xff]  }
  0x48   :  { %3723 = vmatprep.mubr.msk.f32.mxu0 %vm39_vm1, %v3264_v42  ;;  %v3305_v42 = vunpack.c.h.bf16 %v3485_v34  ;;  %v3308_v44 = vunpack.c.l.bf16 %v3486_v40 }
  0x49   :  { %3820 = vmatmul.mubr.msk.f32.gmra.mrb[30].mxu1 %vm39_vm1, %v3393_v43  ;;  %v3519_v43 = vld [vmem:[%s5617_s1 + $0x1d0] sm:$0xff]  }
  0x4a   :  { %3822 = vmatprep.mubr.msk.f32.mxu1 %vm39_vm1, %v3396_v45  ;;  %v3437_v45 = vunpack.c.h.bf16 %v3518_v37  ;;  %v3440_v47 = vunpack.c.l.bf16 %v3519_v43  ;;  %v4588_v37 = vld [vmem:[%s5621_s5] ss:$0 sm:$0xff] }
  0x4b   :  { %3724 = vmatmul.mubr.msk.f32.gmra.mrb[30].mxu0 %vm39_vm1, %v3265_v46  ;;  %v3487_v46 = vld [vmem:[%s5617_s1 + $0xd0] sm:$0xff]  }
  0x4c   :  { %3726 = vmatprep.mubr.msk.f32.mxu0 %vm39_vm1, %v3268_v48  ;;  %v3309_v48 = vunpack.c.h.bf16 %v3486_v40  ;;  %v3312_v50 = vunpack.c.l.bf16 %v3487_v46 }
  0x4d   :  { %3823 = vmatmul.mubr.msk.f32.gmra.mrb[32].mxu1 %vm39_vm1, %v3397_v49  ;;  %v3520_v49 = vld [vmem:[%s5617_s1 + $0x1d8] sm:$0xff]  }
  0x4e   :  { %3825 = vmatprep.mubr.msk.f32.mxu1 %vm39_vm1, %v3400_v51  ;;  %v3441_v51 = vunpack.c.h.bf16 %v3519_v43  ;;  %v3444_v53 = vunpack.c.l.bf16 %v3520_v49 }
  0x4f   :  { %3727 = vmatmul.mubr.msk.f32.gmra.mrb[32].mxu0 %vm39_vm1, %v3269_v52  ;;  %v3488_v52 = vld [vmem:[%s5617_s1 + $0xd8] sm:$0xff]  }
  0x50   :  { %3729 = vmatprep.mubr.msk.f32.mxu0 %vm39_vm1, %v3272_v54  ;;  %v3313_v54 = vunpack.c.h.bf16 %v3487_v46  ;;  %v3316_v56 = vunpack.c.l.bf16 %v3488_v52 }
  0x51   :  { %3826 = vmatmul.mubr.msk.f32.gmra.mrb[34].mxu1 %vm39_vm1, %v3401_v55  ;;  %v3521_v55 = vld [vmem:[%s5617_s1 + $0x1e0] sm:$0xff]  }
  0x52   :  { %3828 = vmatprep.mubr.msk.f32.mxu1 %vm39_vm1, %v3404_v57  ;;  %v3445_v57 = vunpack.c.h.bf16 %v3520_v49  ;;  %v3448_v59 = vunpack.c.l.bf16 %v3521_v55 }
  0x53   :  { %3730 = vmatmul.mubr.msk.f32.gmra.mrb[34].mxu0 %vm39_vm1, %v3273_v58  ;;  %v3489_v58 = vld [vmem:[%s5617_s1 + $0xe0] sm:$0xff]  }
  0x54   :  { %3732 = vmatprep.mubr.msk.f32.mxu0 %vm39_vm1, %v3276_v60  ;;  %v3317_v60 = vunpack.c.h.bf16 %v3488_v52  ;;  %v3320_v62 = vunpack.c.l.bf16 %v3489_v58 }
  0x55   :  { %3829 = vmatmul.mubr.msk.f32.gmra.mrb[36].mxu1 %vm39_vm1, %v3405_v61  ;;  %v3522_v61 = vld [vmem:[%s5617_s1 + $0x1e8] sm:$0xff]  }
  0x56   :  { %3831 = vmatprep.mubr.msk.f32.mxu1 %vm39_vm1, %v3408_v63  ;;  %v3449_v63 = vunpack.c.h.bf16 %v3521_v55  ;;  %v3452_v1 = vunpack.c.l.bf16 %v3522_v61 }
  0x57   :  { %3733 = vmatmul.mubr.msk.f32.gmra.mrb[36].mxu0 %vm39_vm1, %v3277_v0  ;;  %v3490_v0 = vld [vmem:[%s5617_s1 + $0xe8] sm:$0xff]  }
  0x58   :  { %3735 = vmatprep.mubr.msk.f32.mxu0 %vm39_vm1, %v3280_v2  ;;  %v3321_v2 = vunpack.c.h.bf16 %v3489_v58  ;;  %v3324_v4 = vunpack.c.l.bf16 %v3490_v0 }
  0x59   :  { %3832 = vmatmul.mubr.msk.f32.gmra.mrb[38].mxu1 %vm39_vm1, %v3409_v3  ;;  %v3523_v3 = vld [vmem:[%s5617_s1 + $0x1f0] sm:$0xff]  }
  0x5a   :  { %3834 = vmatprep.mubr.msk.f32.mxu1 %vm39_vm1, %v3412_v5  ;;  %v3453_v5 = vunpack.c.h.bf16 %v3522_v61  ;;  %v3456_v7 = vunpack.c.l.bf16 %v3523_v3 }
  0x5b   :  { %3736 = vmatmul.mubr.msk.f32.gmra.mrb[38].mxu0 %vm39_vm1, %v3281_v6  ;;  %v3491_v6 = vld [vmem:[%s5617_s1 + $0xf0] sm:$0xff]  }
  0x5c   :  { %3738 = vmatprep.mubr.msk.f32.mxu0 %vm39_vm1, %v3284_v8  ;;  %v3325_v8 = vunpack.c.h.bf16 %v3490_v0  ;;  %v3328_v10 = vunpack.c.l.bf16 %v3491_v6  ;;  %v3329_v13 = vunpack.c.h.bf16 %v3491_v6 }
  0x5d   :  { %3835 = vmatmul.mubr.msk.f32.gmra.mrb[40].mxu1 %vm39_vm1, %v3413_v9  ;;  %v3524_v9 = vld [vmem:[%s5617_s1 + $0x1f8] sm:$0xff]  }
  0x5e   :  { %3837 = vmatprep.mubr.msk.f32.mxu1 %vm39_vm1, %v3416_v11  ;;  %v3457_v11 = vunpack.c.h.bf16 %v3523_v3 }
  0x5f   :  { %3739 = vmatmul.mubr.msk.f32.gmra.mrb[40].mxu0 %vm39_vm1, %v3285_v12  ;;  %v3460_v12 = vunpack.c.l.bf16 %v3524_v9 }
  0x60   :  { %3741 = vmatprep.mubr.msk.f32.mxu0 %vm39_vm1, %v3288_v14  ;;  %v3461_v14 = vunpack.c.h.bf16 %v3524_v9 }
  0x61   :  { %3838 = vmatmul.mubr.msk.f32.gmra.mrb[42].mxu1 %vm39_vm1, %v3417_v15  ;;  %v3075_v15 = vld [vmem:[%s5620_s4] ss:$0 sm:$0xff] }
  0x62   :  { %3840 = vmatprep.mubr.msk.f32.mxu1 %vm39_vm1, %v3420_v17 }
  0x63   :  { %3742 = vmatmul.mubr.msk.f32.gmra.mrb[42].mxu0 %vm39_vm1, %v3289_v18 }
  0x64   :  { %3744 = vmatprep.mubr.msk.f32.mxu0 %vm39_vm1, %v3292_v20 }
  0x65   :  { %3841 = vmatmul.mubr.msk.f32.gmra.mrb[44].mxu1 %vm39_vm1, %v3421_v21 }
  0x66   :  { %3843 = vmatprep.mubr.msk.f32.mxu1 %vm39_vm1, %v3424_v23 }
  0x67   :  { %3745 = vmatmul.mubr.msk.f32.gmra.mrb[44].mxu0 %vm39_vm1, %v3293_v24 }
  0x68   :  { %3747 = vmatprep.mubr.msk.f32.mxu0 %vm39_vm1, %v3296_v26 }
  0x69   :  { %3844 = vmatmul.mubr.msk.f32.gmra.mrb[46].mxu1 %vm39_vm1, %v3425_v27 }
  0x6a   :  { %3846 = vmatprep.mubr.msk.f32.mxu1 %vm39_vm1, %v3428_v29 }
  0x6b   :  { %3748 = vmatmul.mubr.msk.f32.gmra.mrb[46].mxu0 %vm39_vm1, %v3297_v30 }
  0x6c   :  { %3750 = vmatprep.mubr.msk.f32.mxu0 %vm39_vm1, %v3300_v32 }
  0x6d   :  { %3847 = vmatmul.mubr.msk.f32.gmra.mrb[48].mxu1 %vm39_vm1, %v3429_v33 }
  0x6e   :  { %3849 = vmatprep.mubr.msk.f32.mxu1 %vm39_vm1, %v3432_v35 }
  0x6f   :  { %3751 = vmatmul.mubr.msk.f32.gmra.mrb[48].mxu0 %vm39_vm1, %v3301_v36 }
  0x70   :  { %3753 = vmatprep.mubr.msk.f32.mxu0 %vm39_vm1, %v3304_v38 }
  0x71   :  { %3850 = vmatmul.mubr.msk.f32.gmra.mrb[50].mxu1 %vm39_vm1, %v3433_v39 }
  0x72   :  { %3852 = vmatprep.mubr.msk.f32.mxu1 %vm39_vm1, %v3436_v41 }
  0x73   :  { %3754 = vmatmul.mubr.msk.f32.gmra.mrb[50].mxu0 %vm39_vm1, %v3305_v42 }
  0x74   :  { %3756 = vmatprep.mubr.msk.f32.mxu0 %vm39_vm1, %v3308_v44 }
  0x75   :  { %3853 = vmatmul.mubr.msk.f32.gmra.mrb[52].mxu1 %vm39_vm1, %v3437_v45 }
  0x76   :  { %3855 = vmatprep.mubr.msk.f32.mxu1 %vm39_vm1, %v3440_v47 }
  0x77   :  { %3757 = vmatmul.mubr.msk.f32.gmra.mrb[52].mxu0 %vm39_vm1, %v3309_v48 }
  0x78   :  { %3759 = vmatprep.mubr.msk.f32.mxu0 %vm39_vm1, %v3312_v50 }
  0x79   :  { %3856 = vmatmul.mubr.msk.f32.gmra.mrb[54].mxu1 %vm39_vm1, %v3441_v51 }
  0x7a   :  { %3858 = vmatprep.mubr.msk.f32.mxu1 %vm39_vm1, %v3444_v53 }
  0x7b   :  { %3760 = vmatmul.mubr.msk.f32.gmra.mrb[54].mxu0 %vm39_vm1, %v3313_v54 }
  0x7c   :  { %3762 = vmatprep.mubr.msk.f32.mxu0 %vm39_vm1, %v3316_v56 }
  0x7d   :  { %3859 = vmatmul.mubr.msk.f32.gmra.mrb[56].mxu1 %vm39_vm1, %v3445_v57 }
  0x7e   :  { %3861 = vmatprep.mubr.msk.f32.mxu1 %vm39_vm1, %v3448_v59 }
  0x7f   :  { %3763 = vmatmul.mubr.msk.f32.gmra.mrb[56].mxu0 %vm39_vm1, %v3317_v60 }
  0x80   :  { %3765 = vmatprep.mubr.msk.f32.mxu0 %vm39_vm1, %v3320_v62 }
  0x81   :  { %3862 = vmatmul.mubr.msk.f32.gmra.mrb[58].mxu1 %vm39_vm1, %v3449_v63 }
  0x82   :  { %3864 = vmatprep.mubr.msk.f32.mxu1 %vm39_vm1, %v3452_v1 }
  0x83   :  { %3766 = vmatmul.mubr.msk.f32.gmra.mrb[58].mxu0 %vm39_vm1, %v3321_v2 }
  0x84   :  { %3768 = vmatprep.mubr.msk.f32.mxu0 %vm39_vm1, %v3324_v4 }
  0x85   :  { %3865 = vmatmul.mubr.msk.f32.gmra.mrb[60].mxu1 %vm39_vm1, %v3453_v5 }
  0x86   :  { %3867 = vmatprep.mubr.msk.f32.mxu1 %vm39_vm1, %v3456_v7 }
  0x87   :  { %3769 = vmatmul.mubr.msk.f32.gmra.mrb[60].mxu0 %vm39_vm1, %v3325_v8 }
  0x88   :  { %3771 = vmatprep.mubr.msk.f32.mxu0 %vm39_vm1, %v3328_v10 }
  0x89   :  { %3868 = vmatmul.mubr.msk.f32.gmra.mrb[62].mxu1 %vm39_vm1, %v3457_v11 }
  0x8a   :  { %3870 = vmatprep.mubr.msk.f32.mxu1 %vm39_vm1, %v3460_v12 }
  0x8b   :  { %3772 = vmatmul.mubr.msk.f32.gmra.mrb[62].mxu0 %vm39_vm1, %v3329_v13 }
  0x8d   :  { %3871 = vmatmul.mubr.msk.f32.gmra.mrb[64].mxu1 %vm39_vm1, %v3461_v14 }
  0xde   :  { %v109_v16 = vpop.f32.mrb[0].mxu0 }
  0xdf   :  { %v4575_v17 = vadd.f32 %v3075_v15, %v109_v16  ;;  %v3672_v18 = vpop.f32.mrb[1].mxu0 }
  0xe0   :  { %v3776_v19 = vpop.f32.mrb[0].mxu1 }
  0xe1   :  { %v1525_v20 = vadd.f32 %v3776_v19, %v4575_v17  ;;  %v1133_v21 = vpop.f32.mrb[1].mxu1 }
  0xe2   :  { %v1524_v22 = vadd.f32 %v1133_v21, %v4575_v17 }
  0xe3   :  { %3895 = vtanh.f32 %v1525_v20 }
  0xe4   :  { %3897 = vtanh.f32 %v1524_v22  ;;  %v3779_v23 = vpop.f32.mrb[2].mxu1 }
  0xe5   :  { %v1527_v24 = vadd.f32 %v3779_v23, %v4575_v17  ;;  %v1143_v25 = vpop.f32.mrb[3].mxu1 }
  0xe6   :  { %v1526_v26 = vadd.f32 %v1143_v25, %v4575_v17  ;;  %v3683_v27 = vpop.f32.mrb[2].mxu0 }
  0xe7   :  { %3899 = vtanh.f32 %v1527_v24  ;;  %v1463_v28 = vadd.f32 %v3683_v27, %v4575_v17  ;;  %v823_v29 = vpop.f32.mrb[3].mxu0 }
  0xe8   :  { %3901 = vtanh.f32 %v1526_v26  ;;  %v1462_v30 = vadd.f32 %v823_v29, %v4575_v17  ;;  %v3782_v31 = vpop.f32.mrb[4].mxu1 }
  0xe9   :  { %3903 = vtanh.f32 %v1463_v28  ;;  %v1529_v32 = vadd.f32 %v3782_v31, %v4575_v17  ;;  %v1153_v33 = vpop.f32.mrb[5].mxu1 }
  0xea   :  { %v3686_v34 = vpop.f32.mrb[4].mxu0  ;;  %v1528_v38 = vadd.f32 %v1153_v33, %v4575_v17 }
  0xeb   :  { %3905 = vtanh.f32 %v1529_v32  ;;  %v1465_v35 = vadd.f32 %v3686_v34, %v4575_v17  ;;  %v833_v36 = vpop.f32.mrb[5].mxu0 }
  0xec   :  { %3907 = vtanh.f32 %v1462_v30  ;;  %v1464_v39 = vadd.f32 %v833_v36, %v4575_v17  ;;  %v3785_v40 = vpop.f32.mrb[6].mxu1 }
  0xed   :  { %v3896_v41 = vpop.eup %3895  ;;  %3909 = vtanh.f32 %v1465_v35  ;;  %v1163_v42 = vpop.f32.mrb[7].mxu1  ;;  %v1531_v49 = vadd.f32 %v3785_v40, %v4575_v17 }
  0xee   :  { %v3898_v43 = vpop.eup %3897  ;;  %v3689_v44 = vpop.f32.mrb[6].mxu0  ;;  %v1788_v45 = vmul.f32 %v3896_v41, %v4588_v37  ;;  %3911 = vtanh.f32 %v1464_v39  ;;  %v1530_v46 = vadd.f32 %v1163_v42, %v4575_v17 }
  0xef   :  { %v843_v47 = vpop.f32.mrb[7].mxu0  ;;  %v1787_v48 = vmul.f32 %v3898_v43, %v4588_v37  ;;  %3913 = vtanh.f32 %v1528_v38  ;;  %v1467_v59 = vadd.f32 %v3689_v44, %v4575_v17 }
  0xf0   :  { %v3788_v50 = vpop.f32.mrb[8].mxu1  ;;  %v2042_v51 = vsel %vm39_vm1, %v1788_v45, 0.0  ;;  %3915 = vtanh.f32 %v1530_v46  ;;  %v1466_v62 = vadd.f32 %v843_v47, %v4575_v17 }
  0xf1   :  { %v3900_v52 = vpop.eup %3899  ;;  %v1173_v53 = vpop.f32.mrb[9].mxu1  ;;  %2043 = vadd.xlane.f32.xlu1 %v2042_v51  ;;  %v2039_v54 = vsel %vm39_vm1, %v1787_v48, 0.0  ;;  %3917 = vtanh.f32 %v1531_v49  ;;  %v1533_v9 = vadd.f32 %v3788_v50, %v4575_v17 }
  0xf2   :  { %v3902_v55 = vpop.eup %3901  ;;  %2040 = vadd.xlane.f32.xlu0 %v2039_v54  ;;  %v3692_v56 = vpop.f32.mrb[8].mxu0  ;;  %v1790_v57 = vmul.f32 %v3900_v52, %v4588_v37  ;;  %3919 = vtanh.f32 %v1467_v59  ;;  %v1532_v11 = vadd.f32 %v1173_v53, %v4575_v17 }
  0xf3   :  { %v3904_v58 = vpop.eup %3903  ;;  %v853_v60 = vpop.f32.mrb[9].mxu0  ;;  %v1789_v61 = vmul.f32 %v3902_v55, %v4588_v37  ;;  %3921 = vtanh.f32 %v1466_v62  ;;  %v1469_v22 = vadd.f32 %v3692_v56, %v4575_v17 }
  0xf4   :  { %v3791_v63 = vpop.f32.mrb[10].mxu1  ;;  %v2048_v0 = vsel %vm39_vm1, %v1790_v57, 0.0  ;;  %v1726_v4 = vmul.f32 %v3904_v58, %v4588_v37  ;;  %3923 = vtanh.f32 %v1533_v9  ;;  %v1468_v24 = vadd.f32 %v853_v60, %v4575_v17 }
  0xf5   :  { %v3906_v1 = vpop.eup %3905  ;;  %v1183_v2 = vpop.f32.mrb[11].mxu1  ;;  %2049 = vadd.xlane.f32.xlu1 %v2048_v0  ;;  %v2045_v3 = vsel %vm39_vm1, %v1789_v61, 0.0  ;;  %3925 = vtanh.f32 %v1532_v11  ;;  %v1535_v34 = vadd.f32 %v3791_v63, %v4575_v17 }
  0xf6   :  { %v3908_v5 = vpop.eup %3907  ;;  %2046 = vadd.xlane.f32.xlu0 %v2045_v3  ;;  %v3695_v6 = vpop.f32.mrb[10].mxu0  ;;  %v1792_v7 = vmul.f32 %v3906_v1, %v4588_v37  ;;  %v1856_v18 = vsel %vm39_vm1, %v1726_v4, 0.0  ;;  %3927 = vtanh.f32 %v1469_v22  ;;  %v1534_v36 = vadd.f32 %v1183_v2, %v4575_v17 }
  0xf7   :  { %v3910_v8 = vpop.eup %3909  ;;  %v863_v10 = vpop.f32.mrb[11].mxu0  ;;  %v1725_v19 = vmul.f32 %v3908_v5, %v4588_v37  ;;  %3929 = vtanh.f32 %v1468_v24  ;;  %v1471_v47 = vadd.f32 %v3695_v6, %v4575_v17 }
  0xf8   :  { %v3794_v12 = vpop.f32.mrb[12].mxu1  ;;  %v2054_v13 = vsel %vm39_vm1, %v1792_v7, 0.0  ;;  %v1728_v14 = vmul.f32 %v3910_v8, %v4588_v37  ;;  %v3912_v15 = vpop.eup %3911  ;;  %3931 = vtanh.f32 %v1535_v34  ;;  %v1470_v49 = vadd.f32 %v863_v10, %v4575_v17 }
  0xf9   :  { %v1193_v16 = vpop.f32.mrb[13].mxu1  ;;  %2055 = vadd.xlane.f32.xlu1 %v2054_v13  ;;  %v3914_v20 = vpop.eup %3913  ;;  %v1727_v27 = vmul.f32 %v3912_v15, %v4588_v37  ;;  %v1853_v30 = vsel %vm39_vm1, %v1725_v19, 0.0  ;;  %3933 = vtanh.f32 %v1534_v36  ;;  %v1537_v59 = vadd.f32 %v3794_v12, %v4575_v17 }
  0xfa   :  { %1857 = vadd.xlane.f32.xlu0 %v1856_v18  ;;  %v4612_v21 = vpop.f32.mrb[12].mxu0  ;;  %v1862_v26 = vsel %vm39_vm1, %v1728_v14, 0.0  ;;  %v3916_v28 = vpop.eup %3915  ;;  %v1791_v31 = vmul.f32 %v3914_v20, %v4588_v37  ;;  %3935 = vtanh.f32 %v1471_v47  ;;  %v1536_v61 = vadd.f32 %v1193_v16, %v4575_v17 }
  0xfb   :  { %v4615_v23 = vpop.f32.mrb[13].mxu0  ;;  %v3918_v32 = vpop.eup %3917  ;;  %v1859_v39 = vsel %vm39_vm1, %v1727_v27, 0.0  ;;  %v1793_v40 = vmul.f32 %v3916_v28, %v4588_v37  ;;  %3937 = vtanh.f32 %v1470_v49  ;;  %v1473_v7 = vadd.f32 %v4612_v21, %v4575_v17 }
  0xfc   :  { %v4618_v25 = vpop.f32.mrb[14].mxu1  ;;  %v3920_v41 = vpop.eup %3919  ;;  %v2051_v43 = vsel %vm39_vm1, %v1791_v31, 0.0  ;;  %v1794_v44 = vmul.f32 %v3918_v32, %v4588_v37  ;;  %3939 = vtanh.f32 %v1537_v59  ;;  %v1472_v9 = vadd.f32 %v4615_v23, %v4575_v17 }
  0xfd   :  { %v4622_v29 = vpop.f32.mrb[15].mxu1  ;;  %1863 = vadd.xlane.f32.xlu1 %v1862_v26  ;;  %v3922_v45 = vpop.eup %3921  ;;  %v2057_v51 = vsel %vm39_vm1, %v1793_v40, 0.0  ;;  %v1730_v52 = vmul.f32 %v3920_v41, %v4588_v37  ;;  %3941 = vtanh.f32 %v1536_v61  ;;  %v1539_v22 = vadd.f32 %v4618_v25, %v4575_v17 }
  0xfe   :  { %1854 = vadd.xlane.f32.xlu0 %v1853_v30  ;;  %v4626_v33 = vpop.f32.mrb[14].mxu0  ;;  %v3924_v53 = vpop.eup %3923  ;;  %v2060_v55 = vsel %vm39_vm1, %v1794_v44, 0.0  ;;  %v1729_v56 = vmul.f32 %v3922_v45, %v4588_v37  ;;  %3943 = vtanh.f32 %v1473_v7  ;;  %v1538_v20 = vadd.f32 %v4622_v29, %v4575_v17 }
  0xff   :  { %v4629_v35 = vpop.f32.mrb[15].mxu0  ;;  %v3926_v57 = vpop.eup %3925  ;;  %v1868_v63 = vsel %vm39_vm1, %v1730_v52, 0.0  ;;  %v1796_v0 = vmul.f32 %v3924_v53, %v4588_v37  ;;  %3945 = vtanh.f32 %v1472_v9  ;;  %v1475_v36 = vadd.f32 %v4626_v33, %v4575_v17 }
 0x100   :  { %v4632_v38 = vpop.f32.mrb[16].mxu1  ;;  %v3928_v1 = vpop.eup %3927  ;;  %v1865_v3 = vsel %vm39_vm1, %v1729_v56, 0.0  ;;  %v1795_v4 = vmul.f32 %v3926_v57, %v4588_v37  ;;  %3947 = vtanh.f32 %v1538_v20  ;;  %v1474_v52 = vadd.f32 %v4629_v35, %v4575_v17 }
 0x101   :  { %v4636_v42 = vpop.f32.mrb[17].mxu1  ;;  %1860 = vadd.xlane.f32.xlu1 %v1859_v39  ;;  %v3930_v5 = vpop.eup %3929  ;;  %v2066_v11 = vsel %vm39_vm1, %v1796_v0, 0.0  ;;  %v1732_v12 = vmul.f32 %v3928_v1, %v4588_v37  ;;  %v1541_v25 = vadd.f32 %v4632_v38, %v4575_v17  ;;  %3949 = vtanh.f32 %v1539_v22 }
 0x102   :  { %2052 = vadd.xlane.f32.xlu0 %v2051_v43  ;;  %v4640_v46 = vpop.f32.mrb[16].mxu0  ;;  %v3932_v13 = vpop.eup %3931  ;;  %v2063_v15 = vsel %vm39_vm1, %v1795_v4, 0.0  ;;  %v1731_v16 = vmul.f32 %v3930_v5, %v4588_v37 }
 0x103   :  { %v4643_v48 = vpop.f32.mrb[17].mxu0  ;;  %v3934_v18 = vpop.eup %3933  ;;  %v1874_v24 = vsel %vm39_vm1, %v1732_v12, 0.0  ;;  %v1798_v26 = vmul.f32 %v3932_v13, %v4588_v37  ;;  %3951 = vtanh.f32 %v1541_v25  ;;  %v1477_v33 = vadd.f32 %v4640_v46, %v4575_v17 }
 0x104   :  { %v4646_v50 = vpop.f32.mrb[18].mxu1  ;;  %v3936_v27 = vpop.eup %3935  ;;  %v1871_v30 = vsel %vm39_vm1, %v1731_v16, 0.0  ;;  %v1797_v29 = vmul.f32 %v3934_v18, %v4588_v37  ;;  %3953 = vtanh.f32 %v1475_v36  ;;  %v1476_v18 = vadd.f32 %v4643_v48, %v4575_v17 }
 0x105   :  { %v4650_v54 = vpop.f32.mrb[19].mxu1  ;;  %2058 = vadd.xlane.f32.xlu1 %v2057_v51  ;;  %v3938_v31 = vpop.eup %3937  ;;  %v2072_v40 = vsel %vm39_vm1, %v1798_v26, 0.0  ;;  %v1734_v41 = vmul.f32 %v3936_v27, %v4588_v37  ;;  %3955 = vtanh.f32 %v1477_v33  ;;  %v1543_v35 = vadd.f32 %v4646_v50, %v4575_v17 }
 0x106   :  { %2061 = vadd.xlane.f32.xlu0 %v2060_v55  ;;  %v4654_v58 = vpop.f32.mrb[18].mxu0  ;;  %v3940_v43 = vpop.eup %3939  ;;  %v2069_v45 = vsel %vm39_vm1, %v1797_v29, 0.0  ;;  %v1733_v38 = vmul.f32 %v3938_v31, %v4588_v37  ;;  %3957 = vtanh.f32 %v1474_v52  ;;  %v1542_v36 = vadd.f32 %v4650_v54, %v4575_v17 }
 0x107   :  { %v4657_v60 = vpop.f32.mrb[19].mxu0  ;;  %v3942_v47 = vpop.eup %3941  ;;  %v1880_v55 = vsel %vm39_vm1, %v1734_v41, 0.0  ;;  %v1800_v56 = vmul.f32 %v3940_v43, %v4588_v37  ;;  %3959 = vtanh.f32 %v1543_v35 }
 0x108   :  { %v4660_v62 = vpop.f32.mrb[20].mxu1  ;;  %v3944_v57 = vpop.eup %3943  ;;  %v1877_v61 = vsel %vm39_vm1, %v1733_v38, 0.0  ;;  %v1799_v46 = vmul.f32 %v3942_v47, %v4588_v37 }
 0x109   :  { %v4664_v2 = vpop.f32.mrb[21].mxu1  ;;  %1869 = vadd.xlane.f32.xlu1 %v1868_v63  ;;  %v3946_v63 = vpop.eup %3945  ;;  %v2078_v5 = vsel %vm39_vm1, %v1800_v56, 0.0  ;;  %v1736_v7 = vmul.f32 %v3944_v57, %v4588_v37  ;;  %v1545_v48 = vadd.f32 %v4660_v62, %v4575_v17  ;;  %v1478_v56 = vadd.f32 %v4657_v60, %v4575_v17 }
 0x10a   :  { %1866 = vadd.xlane.f32.xlu0 %v1865_v3  ;;  %v4668_v6 = vpop.f32.mrb[20].mxu0  ;;  %v1540_v3 = vadd.f32 %v4636_v42, %v4575_v17  ;;  %v3948_v9 = vpop.eup %3947  ;;  %v2075_v12 = vsel %vm39_vm1, %v1799_v46, 0.0  ;;  %v1735_v50 = vmul.f32 %v3946_v63, %v4588_v37  ;;  %v1479_v42 = vadd.f32 %v4654_v58, %v4575_v17 }
 0x10b   :  { %v4672_v8 = vpop.f32.mrb[21].mxu0  ;;  %v3950_v13 = vpop.eup %3949  ;;  %v1886_v22 = vsel %vm39_vm1, %v1736_v7, 0.0  ;;  %v1481_v54 = vadd.f32 %v4668_v6, %v4575_v17 }
 0x10c   :  { %v4676_v10 = vpop.f32.mrb[22].mxu1  ;;  %3961 = vtanh.f32 %v1540_v3  ;;  %v1802_v58 = vmul.f32 %v3950_v13, %v4588_v37  ;;  %v1480_v60 = vadd.f32 %v4672_v8, %v4575_v17 }
 0x10d   :  { %v4680_v14 = vpop.f32.mrb[23].mxu1  ;;  %2067 = vadd.xlane.f32.xlu1 %v2066_v11  ;;  %v3952_v26 = vpop.eup %3951  ;;  %3963 = vtanh.f32 %v1479_v42 }
 0x10e   :  { %2064 = vadd.xlane.f32.xlu0 %v2063_v15  ;;  %v4684_v19 = vpop.f32.mrb[22].mxu0  ;;  %v3954_v29 = vpop.eup %3953  ;;  %3965 = vtanh.f32 %v1476_v18  ;;  %v1804_v43 = vmul.f32 %v3952_v26, %v4588_v37  ;;  %v2084_v47 = vsel %vm39_vm1, %v1802_v58, 0.0 }
 0x10f   :  { %v4688_v21 = vpop.f32.mrb[23].mxu0  ;;  %v1738_v62 = vmul.f32 %v3954_v29, %v4588_v37  ;;  %3967 = vtanh.f32 %v1545_v48  ;;  %v1547_v29 = vadd.f32 %v4676_v10, %v4575_v17 }
 0x110   :  { %v4692_v23 = vpop.f32.mrb[24].mxu1  ;;  %3969 = vtanh.f32 %v1542_v36  ;;  %v1482_v10 = vadd.f32 %v4688_v21, %v4575_v17 }
 0x111   :  { %v4696_v28 = vpop.f32.mrb[25].mxu1  ;;  %1875 = vadd.xlane.f32.xlu1 %v1874_v24  ;;  %v1801_v24 = vmul.f32 %v3948_v9, %v4588_v37  ;;  %v1892_v3 = vsel %vm39_vm1, %v1738_v62, 0.0  ;;  %3971 = vtanh.f32 %v1481_v54 }
 0x112   :  { %1872 = vadd.xlane.f32.xlu0 %v1871_v30  ;;  %v4700_v32 = vpop.f32.mrb[24].mxu0  ;;  %v1883_v30 = vsel %vm39_vm1, %v1735_v50, 0.0  ;;  %3973 = vtanh.f32 %v1478_v56  ;;  %v1483_v56 = vadd.f32 %v4684_v19, %v4575_v17  ;;  %v1549_v19 = vadd.f32 %v4692_v23, %v4575_v17 }
 0x113   :  { %v4704_v34 = vpop.f32.mrb[25].mxu0  ;;  %v2081_v41 = vsel %vm39_vm1, %v1801_v24, 0.0  ;;  %3975 = vtanh.f32 %v1480_v60 }
 0x114   :  { %v4708_v39 = vpop.f32.mrb[26].mxu1 }
 0x115   :  { %v4712_v44 = vpop.f32.mrb[27].mxu1  ;;  %2073 = vadd.xlane.f32.xlu1 %v2072_v40 }
 0x116   :  { %2070 = vadd.xlane.f32.xlu0 %v2069_v45  ;;  %v4716_v49 = vpop.f32.mrb[26].mxu0  ;;  %v3956_v45 = vpop.eup %3955 }
 0x117   :  { %v4720_v51 = vpop.f32.mrb[27].mxu0  ;;  %v3958_v33 = vpop.eup %3957  ;;  %v1740_v46 = vmul.f32 %v3956_v45, %v4588_v37 }
 0x118   :  { %v4724_v53 = vpop.f32.mrb[28].mxu1  ;;  %v3960_v63 = vpop.eup %3959  ;;  %v1737_v6 = vmul.f32 %v3958_v33, %v4588_v37 }
 0x119   :  { %v4728_v59 = vpop.f32.mrb[29].mxu1  ;;  %1881 = vadd.xlane.f32.xlu1 %v1880_v55  ;;  %v1898_v13 = vsel %vm39_vm1, %v1740_v46, 0.0  ;;  %v1806_v42 = vmul.f32 %v3960_v63, %v4588_v37 }
 0x11a   :  { %1878 = vadd.xlane.f32.xlu0 %v1877_v61  ;;  %v4732_v0 = vpop.f32.mrb[28].mxu0  ;;  %v2090_v61 = vsel %vm39_vm1, %v1804_v43, 0.0  ;;  %v1889_v24 = vsel %vm39_vm1, %v1737_v6, 0.0 }
 0x11b   :  { %v4736_v1 = vpop.f32.mrb[29].mxu0  ;;  %v2096_v36 = vsel %vm39_vm1, %v1806_v42, 0.0  ;;  %v1548_v42 = vadd.f32 %v4696_v28, %v4575_v17  ;;  %v1485_v28 = vadd.f32 %v4700_v32, %v4575_v17 }
 0x11c   :  { %v4740_v4 = vpop.f32.mrb[30].mxu1 }
 0x11d   :  { %v4744_v11 = vpop.f32.mrb[31].mxu1  ;;  %2079 = vadd.xlane.f32.xlu1 %v2078_v5  ;;  %v3962_v5 = vpop.eup %3961 }
 0x11e   :  { %2076 = vadd.xlane.f32.xlu0 %v2075_v12  ;;  %v4748_v15 = vpop.f32.mrb[30].mxu0  ;;  %v1544_v12 = vadd.f32 %v4664_v2, %v4575_v17  ;;  %v3964_v18 = vpop.eup %3963  ;;  %v1803_v8 = vmul.f32 %v3962_v5, %v4588_v37  ;;  %v1546_v2 = vadd.f32 %v4680_v14, %v4575_v17 }
 0x11f   :  { %v4752_v16 = vpop.f32.mrb[31].mxu0  ;;  %v3966_v26 = vpop.eup %3965 }
 0x120   :  { %v4756_v20 = vpop.f32.mrb[32].mxu1  ;;  %3977 = vtanh.f32 %v1544_v12  ;;  %v3968_v43 = vpop.eup %3967  ;;  %v1739_v14 = vmul.f32 %v3966_v26, %v4588_v37 }
 0x121   :  { %v4760_v27 = vpop.f32.mrb[33].mxu1  ;;  %1887 = vadd.xlane.f32.xlu1 %v1886_v22  ;;  %v3970_v62 = vpop.eup %3969  ;;  %3979 = vtanh.f32 %v1546_v2  ;;  %v1808_v63 = vmul.f32 %v3968_v43, %v4588_v37 }
 0x122   :  { %1884 = vadd.xlane.f32.xlu0 %v1883_v30  ;;  %v4764_v31 = vpop.f32.mrb[32].mxu0  ;;  %3981 = vtanh.f32 %v1547_v29  ;;  %v1895_v5 = vsel %vm39_vm1, %v1739_v14, 0.0  ;;  %v1805_v21 = vmul.f32 %v3970_v62, %v4588_v37 }
 0x123   :  { %v4768_v25 = vpop.f32.mrb[33].mxu0  ;;  %3983 = vtanh.f32 %v1482_v10 }
 0x124   :  { %v4772_v40 = vpop.f32.mrb[34].mxu1  ;;  %3985 = vtanh.f32 %v1483_v56  ;;  %v2093_v29 = vsel %vm39_vm1, %v1805_v21, 0.0 }
 0x125   :  { %v4776_v38 = vpop.f32.mrb[35].mxu1  ;;  %2082 = vadd.xlane.f32.xlu1 %v2081_v41  ;;  %v1742_v41 = vmul.f32 %v3964_v18, %v4588_v37  ;;  %3987 = vtanh.f32 %v1549_v19 }
 0x126   :  { %2085 = vadd.xlane.f32.xlu0 %v2084_v47  ;;  %v4780_v52 = vpop.f32.mrb[34].mxu0  ;;  %v2087_v47 = vsel %vm39_vm1, %v1803_v8, 0.0  ;;  %3989 = vtanh.f32 %v1548_v42 }
 0x127   :  { %v4784_v55 = vpop.f32.mrb[35].mxu0  ;;  %v1904_v46 = vsel %vm39_vm1, %v1742_v41, 0.0  ;;  %3991 = vtanh.f32 %v1485_v28 }
 0x128   :  { %v4788_v57 = vpop.f32.mrb[36].mxu1 }
 0x129   :  { %v4792_v35 = vpop.f32.mrb[37].mxu1  ;;  %2091 = vadd.xlane.f32.xlu1 %v2090_v61 }
 0x12a   :  { %1893 = vadd.xlane.f32.xlu0 %v1892_v3  ;;  %v4796_v7 = vpop.f32.mrb[36].mxu0  ;;  %v3972_v3 = vpop.eup %3971 }
 0x12b   :  { %v4800_v9 = vpop.f32.mrb[37].mxu0  ;;  %v3974_v60 = vpop.eup %3973  ;;  %v1744_v8 = vmul.f32 %v3972_v3, %v4588_v37 }
 0x12c   :  { %v4804_v50 = vpop.f32.mrb[38].mxu1  ;;  %v3976_v26 = vpop.eup %3975  ;;  %v1741_v23 = vmul.f32 %v3974_v60, %v4588_v37  ;;  %v1550_v60 = vadd.f32 %v4712_v44, %v4575_v17  ;;  %v1487_v44 = vadd.f32 %v4716_v49, %v4575_v17 }
 0x12d   :  { %v4808_v22 = vpop.f32.mrb[39].mxu1  ;;  %1899 = vadd.xlane.f32.xlu1 %v1898_v13  ;;  %v1910_v62 = vsel %vm39_vm1, %v1744_v8, 0.0  ;;  %v1743_v10 = vmul.f32 %v3976_v26, %v4588_v37 }
 0x12e   :  { %1890 = vadd.xlane.f32.xlu0 %v1889_v24  ;;  %v4812_v30 = vpop.f32.mrb[38].mxu0  ;;  %v2102_v24 = vsel %vm39_vm1, %v1808_v63, 0.0  ;;  %v1901_v63 = vsel %vm39_vm1, %v1741_v23, 0.0 }
 0x12f   :  { %v4816_v58 = vpop.f32.mrb[39].mxu0  ;;  %v1907_v42 = vsel %vm39_vm1, %v1743_v10, 0.0 }
 0x130   :  { %v4820_v48 = vpop.f32.mrb[40].mxu1 }
 0x131   :  { %v4824_v45 = vpop.f32.mrb[41].mxu1  ;;  %2097 = vadd.xlane.f32.xlu1 %v2096_v36  ;;  %v3978_v36 = vpop.eup %3977 }
 0x132   :  { %2088 = vadd.xlane.f32.xlu0 %v2087_v47  ;;  %v4828_v33 = vpop.f32.mrb[40].mxu0  ;;  %v1484_v47 = vadd.f32 %v4704_v34, %v4575_v17  ;;  %v3980_v56 = vpop.eup %3979  ;;  %v1807_v32 = vmul.f32 %v3978_v36, %v4588_v37  ;;  %v1551_v34 = vadd.f32 %v4708_v39, %v4575_v17 }
 0x133   :  { %v4832_v54 = vpop.f32.mrb[41].mxu0  ;;  %v3982_v3 = vpop.eup %3981 }
 0x134   :  { %v4836_v61 = vpop.f32.mrb[42].mxu1  ;;  %3993 = vtanh.f32 %v1484_v47  ;;  %v3984_v8 = vpop.eup %3983  ;;  %v1810_v39 = vmul.f32 %v3982_v3, %v4588_v37  ;;  %v1486_v47 = vadd.f32 %v4720_v51, %v4575_v17  ;;  %v1553_v51 = vadd.f32 %v4724_v53, %v4575_v17 }
 0x135   :  { %v4840_v6 = vpop.f32.mrb[43].mxu1  ;;  %1905 = vadd.xlane.f32.xlu1 %v1904_v46  ;;  %v3986_v23 = vpop.eup %3985  ;;  %3995 = vtanh.f32 %v1551_v34 }
 0x136   :  { %1896 = vadd.xlane.f32.xlu0 %v1895_v5  ;;  %v4844_v12 = vpop.f32.mrb[42].mxu0  ;;  %3997 = vtanh.f32 %v1550_v60  ;;  %v2108_v3 = vsel %vm39_vm1, %v1810_v39, 0.0  ;;  %v1746_v49 = vmul.f32 %v3986_v23, %v4588_v37 }
 0x137   :  { %v4848_v13 = vpop.f32.mrb[43].mxu0  ;;  %3999 = vtanh.f32 %v1487_v44 }
 0x138   :  { %v4852_v18 = vpop.f32.mrb[44].mxu1  ;;  %4001 = vtanh.f32 %v1486_v47  ;;  %v1916_v44 = vsel %vm39_vm1, %v1746_v49, 0.0 }
 0x139   :  { %v4856_v2 = vpop.f32.mrb[45].mxu1  ;;  %2103 = vadd.xlane.f32.xlu1 %v2102_v24  ;;  %v1809_v24 = vmul.f32 %v3980_v56, %v4588_v37  ;;  %v1745_v56 = vmul.f32 %v3984_v8, %v4588_v37  ;;  %4003 = vtanh.f32 %v1553_v51 }
 0x13a   :  { %2094 = vadd.xlane.f32.xlu0 %v2093_v29  ;;  %v4860_v41 = vpop.f32.mrb[44].mxu0  ;;  %v2099_v29 = vsel %vm39_vm1, %v1807_v32, 0.0 }
 0x13b   :  { %v4864_v43 = vpop.f32.mrb[45].mxu0  ;;  %v2105_v10 = vsel %vm39_vm1, %v1809_v24, 0.0  ;;  %v1552_v24 = vadd.f32 %v4728_v59, %v4575_v17  ;;  %v1489_v59 = vadd.f32 %v4732_v0, %v4575_v17 }
 0x13c   :  { %v4868_v14 = vpop.f32.mrb[46].mxu1 }
 0x13d   :  { %v4872_v46 = vpop.f32.mrb[47].mxu1  ;;  %1911 = vadd.xlane.f32.xlu1 %v1910_v62  ;;  %4005 = vtanh.f32 %v1552_v24 }
 0x13e   :  { %1902 = vadd.xlane.f32.xlu0 %v1901_v63  ;;  %v4876_v5 = vpop.f32.mrb[46].mxu0  ;;  %v3988_v63 = vpop.eup %3987  ;;  %4007 = vtanh.f32 %v1489_v59 }
 0x13f   :  { %v4880_v21 = vpop.f32.mrb[47].mxu0  ;;  %v3990_v34 = vpop.eup %3989  ;;  %v1812_v39 = vmul.f32 %v3988_v63, %v4588_v37 }
 0x140   :  { %v4884_v19 = vpop.f32.mrb[48].mxu1  ;;  %v3992_v23 = vpop.eup %3991  ;;  %v1811_v53 = vmul.f32 %v3990_v34, %v4588_v37 }
 0x141   :  { %5624 = vst [vmem:[#allocation5_spill] sm:$0xff] %v4884_v19  ;;  %v4888_v26 = vpop.f32.mrb[49].mxu1  ;;  %1908 = vadd.xlane.f32.xlu1 %v1907_v42  ;;  %v2114_v49 = vsel %vm39_vm1, %v1812_v39, 0.0  ;;  %v1748_v34 = vmul.f32 %v3992_v23, %v4588_v37  ;;  %v1555_v39 = vadd.f32 %v4740_v4, %v4575_v17  ;;  %v1490_v4 = vadd.f32 %v4752_v16, %v4575_v17 }
 0x142   :  { %2100 = vadd.xlane.f32.xlu0 %v2099_v29  ;;  %v4892_v36 = vpop.f32.mrb[48].mxu0  ;;  %v1913_v29 = vsel %vm39_vm1, %v1745_v56, 0.0  ;;  %v1488_v56 = vadd.f32 %v4736_v1, %v4575_v17  ;;  %v2111_v51 = vsel %vm39_vm1, %v1811_v53, 0.0  ;;  %v1554_v1 = vadd.f32 %v4744_v11, %v4575_v17 }
 0x143   :  { %v4896_v28 = vpop.f32.mrb[49].mxu0  ;;  %v1922_v53 = vsel %vm39_vm1, %v1748_v34, 0.0  ;;  %v1491_v34 = vadd.f32 %v4748_v15, %v4575_v17  ;;  %v1557_v15 = vadd.f32 %v4756_v20, %v4575_v17 }
 0x144   :  { %v4900_v62 = vpop.f32.mrb[50].mxu1  ;;  %4009 = vtanh.f32 %v1488_v56 }
 0x145   :  { %v4904_v32 = vpop.f32.mrb[51].mxu1  ;;  %2106 = vadd.xlane.f32.xlu1 %v2105_v10  ;;  %4011 = vtanh.f32 %v1554_v1 }
 0x146   :  { %2109 = vadd.xlane.f32.xlu0 %v2108_v3  ;;  %v4908_v60 = vpop.f32.mrb[50].mxu0  ;;  %v3994_v3 = vpop.eup %3993  ;;  %4013 = vtanh.f32 %v1555_v39 }
 0x147   :  { %v4912_v42 = vpop.f32.mrb[51].mxu0  ;;  %v1747_v0 = vmul.f32 %v3994_v3, %v4588_v37  ;;  %4015 = vtanh.f32 %v1490_v4 }
 0x148   :  { %v4916_v8 = vpop.f32.mrb[52].mxu1  ;;  %4017 = vtanh.f32 %v1491_v34 }
 0x149   :  { %v4920_v10 = vpop.f32.mrb[53].mxu1  ;;  %1914 = vadd.xlane.f32.xlu1 %v1913_v29  ;;  %v3996_v29 = vpop.eup %3995  ;;  %v1919_v59 = vsel %vm39_vm1, %v1747_v0, 0.0  ;;  %4019 = vtanh.f32 %v1557_v15 }
 0x14a   :  { %1917 = vadd.xlane.f32.xlu0 %v1916_v44  ;;  %v4924_v47 = vpop.f32.mrb[52].mxu0  ;;  %v1814_v3 = vmul.f32 %v3996_v29, %v4588_v37 }
 0x14b   :  { %5625 = vst [vmem:[#allocation6_spill] sm:$0xff] %v4924_v47  ;;  %v4928_v19 = vpop.f32.mrb[53].mxu0  ;;  %v3998_v47 = vpop.eup %3997 }
 0x14c   :  { %v4932_v63 = vpop.f32.mrb[54].mxu1  ;;  %v1813_v11 = vmul.f32 %v3998_v47, %v4588_v37  ;;  %v2120_v0 = vsel %vm39_vm1, %v1814_v3, 0.0  ;;  %v1556_v3 = vadd.f32 %v4760_v27, %v4575_v17  ;;  %v1493_v27 = vadd.f32 %v4764_v31, %v4575_v17 }
 0x14d   :  { %5626 = vst [vmem:[#allocation7_spill] sm:$0xff] %v4932_v63  ;;  %v4936_v44 = vpop.f32.mrb[55].mxu1  ;;  %2115 = vadd.xlane.f32.xlu1 %v2114_v49  ;;  %v4000_v49 = vpop.eup %3999 }
 0x14e   :  { %2112 = vadd.xlane.f32.xlu0 %v2111_v51  ;;  %v4940_v24 = vpop.f32.mrb[54].mxu0  ;;  %v1750_v47 = vmul.f32 %v4000_v49, %v4588_v37  ;;  %v2117_v1 = vsel %vm39_vm1, %v1813_v11, 0.0  ;;  %4021 = vtanh.f32 %v1556_v3 }
 0x14f   :  { %5627 = vst [vmem:[#allocation8_spill] sm:$0xff] %v4940_v24  ;;  %v4944_v63 = vpop.f32.mrb[55].mxu0  ;;  %v4002_v24 = vpop.eup %4001  ;;  %4023 = vtanh.f32 %v1493_v27 }
 0x150   :  { %v4948_v23 = vpop.f32.mrb[56].mxu1  ;;  %v1749_v16 = vmul.f32 %v4002_v24, %v4588_v37  ;;  %v1928_v11 = vsel %vm39_vm1, %v1750_v47, 0.0  ;;  %v1492_v47 = vadd.f32 %v4768_v25, %v4575_v17  ;;  %v1559_v25 = vadd.f32 %v4772_v40, %v4575_v17 }
 0x151   :  { %5628 = vst [vmem:[#allocation9_spill] sm:$0xff] %v4948_v23  ;;  %v4952_v51 = vpop.f32.mrb[57].mxu1  ;;  %1923 = vadd.xlane.f32.xlu1 %v1922_v53  ;;  %v4004_v53 = vpop.eup %4003 }
 0x152   :  { %5629 = vst [vmem:[#allocation10_spill] sm:$0xff] %v4952_v51  ;;  %1920 = vadd.xlane.f32.xlu0 %v1919_v59  ;;  %v4956_v56 = vpop.f32.mrb[56].mxu0  ;;  %v4006_v51 = vpop.eup %4005  ;;  %v1816_v24 = vmul.f32 %v4004_v53, %v4588_v37  ;;  %v1925_v4 = vsel %vm39_vm1, %v1749_v16, 0.0  ;;  %4025 = vtanh.f32 %v1492_v47  ;;  %v1494_v47 = vadd.f32 %v4784_v55, %v4575_v17 }
 0x153   :  { %v4960_v23 = vpop.f32.mrb[57].mxu0  ;;  %v1815_v20 = vmul.f32 %v4006_v51, %v4588_v37  ;;  %4027 = vtanh.f32 %v1559_v25  ;;  %v1560_v55 = vadd.f32 %v4792_v35, %v4575_v17  ;;  %v1496_v35 = vadd.f32 %v4800_v9, %v4575_v17 }
 0x154   :  { %v4964_v29 = vpop.f32.mrb[58].mxu1  ;;  %v2126_v16 = vsel %vm39_vm1, %v1816_v24, 0.0  ;;  %v1558_v24 = vadd.f32 %v4776_v38, %v4575_v17  ;;  %v1495_v38 = vadd.f32 %v4780_v52, %v4575_v17  ;;  %v1561_v52 = vadd.f32 %v4788_v57, %v4575_v17 }
 0x155   :  { %5630 = vst [vmem:[#allocation11_spill] sm:$0xff] %v4964_v29  ;;  %v4968_v59 = vpop.f32.mrb[59].mxu1  ;;  %2121 = vadd.xlane.f32.xlu1 %v2120_v0  ;;  %v4008_v0 = vpop.eup %4007  ;;  %v2123_v15 = vsel %vm39_vm1, %v1815_v20, 0.0  ;;  %v1497_v57 = vadd.f32 %v4796_v7, %v4575_v17  ;;  %v1562_v7 = vadd.f32 %v4808_v22, %v4575_v17  ;;  %v1563_v9 = vadd.f32 %v4804_v50, %v4575_v17 }
 0x156   :  { %2118 = vadd.xlane.f32.xlu0 %v2117_v1  ;;  %v4972_v39 = vpop.f32.mrb[58].mxu0  ;;  %v1752_v51 = vmul.f32 %v4008_v0, %v4588_v37  ;;  %4029 = vtanh.f32 %v1558_v24  ;;  %v1498_v50 = vadd.f32 %v4816_v58, %v4575_v17  ;;  %v1565_v58 = vadd.f32 %v4820_v48, %v4575_v17 }
 0x157   :  { %5631 = vst [vmem:[#allocation12_spill] sm:$0xff] %v4972_v39  ;;  %v4976_v29 = vpop.f32.mrb[59].mxu0  ;;  %v4010_v39 = vpop.eup %4009  ;;  %4031 = vtanh.f32 %v1495_v38  ;;  %v1501_v48 = vadd.f32 %v4828_v33, %v4575_v17  ;;  %v1567_v33 = vadd.f32 %v4836_v61, %v4575_v17 }
 0x158   :  { %v4980_v49 = vpop.f32.mrb[60].mxu1  ;;  %v1751_v31 = vmul.f32 %v4010_v39, %v4588_v37  ;;  %v1934_v20 = vsel %vm39_vm1, %v1752_v51, 0.0  ;;  %4033 = vtanh.f32 %v1494_v47 }
 0x159   :  { %5632 = vst [vmem:[#allocation13_spill] sm:$0xff] %v4980_v49  ;;  %v4984_v1 = vpop.f32.mrb[61].mxu1  ;;  %1929 = vadd.xlane.f32.xlu1 %v1928_v11  ;;  %v4012_v11 = vpop.eup %4011  ;;  %4035 = vtanh.f32 %v1561_v52 }
 0x15a   :  { %1926 = vadd.xlane.f32.xlu0 %v1925_v4  ;;  %v4988_v34 = vpop.f32.mrb[60].mxu0  ;;  %v1817_v39 = vmul.f32 %v4012_v11, %v4588_v37  ;;  %v1931_v27 = vsel %vm39_vm1, %v1751_v31, 0.0  ;;  %4037 = vtanh.f32 %v1560_v55 }
 0x15b   :  { %5633 = vst [vmem:[#allocation14_spill] sm:$0xff] %v4988_v34  ;;  %v4992_v49 = vpop.f32.mrb[61].mxu0  ;;  %v4014_v34 = vpop.eup %4013  ;;  %4039 = vtanh.f32 %v1497_v57 }
 0x15c   :  { %v4996_v53 = vpop.f32.mrb[62].mxu1  ;;  %v1818_v40 = vmul.f32 %v4014_v34, %v4588_v37  ;;  %v2129_v51 = vsel %vm39_vm1, %v1817_v39, 0.0  ;;  %4041 = vtanh.f32 %v1496_v35 }
 0x15d   :  { %5634 = vst [vmem:[#allocation15_spill] sm:$0xff] %v4996_v53  ;;  %v5000_v4 = vpop.f32.mrb[63].mxu1  ;;  %2127 = vadd.xlane.f32.xlu1 %v2126_v16  ;;  %v4016_v16 = vpop.eup %4015  ;;  %4043 = vtanh.f32 %v1562_v7 }
 0x15e   :  { %5635 = vst [vmem:[#allocation16_spill] sm:$0xff] %v5000_v4  ;;  %2124 = vadd.xlane.f32.xlu0 %v2123_v15  ;;  %v5004_v3 = vpop.f32.mrb[62].mxu0  ;;  %v4018_v4 = vpop.eup %4017  ;;  %v1753_v11 = vmul.f32 %v4016_v16, %v4588_v37  ;;  %v2132_v31 = vsel %vm39_vm1, %v1818_v40, 0.0  ;;  %4045 = vtanh.f32 %v1563_v9 }
 0x15f   :  { %v5008_v53 = vpop.f32.mrb[63].mxu0  ;;  %v1754_v34 = vmul.f32 %v4018_v4, %v4588_v37  ;;  %4047 = vtanh.f32 %v1498_v50 }
 0x160   :  { %v5012_v0 = vpop.f32.mrb[64].mxu1  ;;  %v1937_v25 = vsel %vm39_vm1, %v1753_v11, 0.0 }
 0x161   :  { %v5016_v15 = vpop.f32.mrb[65].mxu1  ;;  %1935 = vadd.xlane.f32.xlu1 %v1934_v20  ;;  %v1940_v16 = vsel %vm39_vm1, %v1754_v34, 0.0  ;;  %v5052_v34 = vld [vmem:[%s5621_s5] ss:$0 sm:$0xff] }
 0x162   :  { %5636 = vst [vmem:[#allocation17_spill] sm:$0xff] %v5016_v15  ;;  %1932 = vadd.xlane.f32.xlu0 %v1931_v27  ;;  %v4020_v15 = vpop.eup %4019 }
 0x163   :  { %v4022_v20 = vpop.eup %4021  ;;  %v1820_v24 = vmul.f32 %v4020_v15, %v4588_v37 }
 0x164   :  { %v4024_v39 = vpop.eup %4023  ;;  %v1819_v4 = vmul.f32 %v4022_v20, %v4588_v37 }
 0x165   :  { %2130 = vadd.xlane.f32.xlu1 %v2129_v51  ;;  %v4026_v27 = vpop.eup %4025  ;;  %v2138_v40 = vsel %vm39_vm1, %v1820_v24, 0.0  ;;  %v1756_v15 = vmul.f32 %v4024_v39, %v4588_v37 }
 0x166   :  { %2133 = vadd.xlane.f32.xlu0 %v2132_v31  ;;  %v4028_v38 = vpop.eup %4027  ;;  %v2135_v47 = vsel %vm39_vm1, %v1819_v4, 0.0  ;;  %v1755_v51 = vmul.f32 %v4026_v27, %v4588_v37 }
 0x167   :  { %v4030_v11 = vpop.eup %4029  ;;  %v1946_v31 = vsel %vm39_vm1, %v1756_v15, 0.0  ;;  %v1822_v20 = vmul.f32 %v5052_v34, %v4028_v38 }
 0x168   :  { %v4032_v37 = vpop.eup %4031  ;;  %v1943_v52 = vsel %vm39_vm1, %v1755_v51, 0.0  ;;  %v1821_v55 = vmul.f32 %v5052_v34, %v4030_v11  ;;  %v2365_v51 = vlaneseq }
 0x169   :  { %1938 = vadd.xlane.f32.xlu1 %v1937_v25  ;;  %v4034_v22 = vpop.eup %4033  ;;  %v1499_v25 = vadd.f32 %v4812_v30, %v4575_v17  ;;  %v2144_v24 = vsel %vm39_vm1, %v1822_v20, 0.0  ;;  %v1758_v39 = vmul.f32 %v5052_v34, %v4032_v37  ;;  %v1564_v30 = vadd.f32 %v4824_v45, %v4575_v17 }
 0x16a   :  { %1941 = vadd.xlane.f32.xlu0 %v1940_v16  ;;  %v4036_v16 = vpop.eup %4035  ;;  %v2141_v4 = vsel %vm39_vm1, %v1821_v55, 0.0  ;;  %v1757_v27 = vmul.f32 %v5052_v34, %v4034_v22  ;;  %v1500_v45 = vadd.f32 %v4832_v54, %v4575_v17  ;;  %v5080_v37 = vand.u32 127, %v2365_v51 }
 0x16b   :  { %v4038_v57 = vpop.eup %4037  ;;  %4049 = vtanh.f32 %v1499_v25  ;;  %v1952_v35 = vsel %vm39_vm1, %v1758_v39, 0.0  ;;  %v1566_v54 = vadd.f32 %v4840_v6, %v4575_v17 }
 0x16c   :  { %v4040_v15 = vpop.eup %4039  ;;  %v1949_v38 = vsel %vm39_vm1, %v1757_v27, 0.0  ;;  %4051 = vtanh.f32 %v1565_v58  ;;  %v1503_v58 = vadd.f32 %v4844_v12, %v4575_v17  ;;  %vm3049_vm10 = vcmp.ge.s32.totalorder %v5080_v37, 8 }
 0x16d   :  { %2139 = vadd.xlane.f32.xlu1 %v2138_v40  ;;  %v1824_v40 = vmul.f32 %v5052_v34, %v4036_v16  ;;  %v4042_v11 = vpop.eup %4041  ;;  %4053 = vtanh.f32 %v1564_v30  ;;  %v1760_v9 = vmul.f32 %v5052_v34, %v4040_v15 }
 0x16e   :  { %2136 = vadd.xlane.f32.xlu0 %v2135_v47  ;;  %v1823_v47 = vmul.f32 %v5052_v34, %v4038_v57  ;;  %v1759_v55 = vmul.f32 %v5052_v34, %v4042_v11  ;;  %4055 = vtanh.f32 %v1501_v48 }
 0x16f   :  { %v2150_v7 = vsel %vm39_vm1, %v1824_v40, 0.0  ;;  %4057 = vtanh.f32 %v1500_v45  ;;  %v1502_v40 = vadd.f32 %v4848_v13, %v4575_v17  ;;  %v1569_v45 = vadd.f32 %v4852_v18, %v4575_v17 }
 0x170   :  { %v2147_v20 = vsel %vm39_vm1, %v1823_v47, 0.0  ;;  %v1955_v61 = vsel %vm39_vm1, %v1759_v55, 0.0  ;;  %4059 = vtanh.f32 %v1567_v33 }
 0x171   :  { %1947 = vadd.xlane.f32.xlu1 %v1946_v31  ;;  %v4044_v31 = vpop.eup %4043  ;;  %4061 = vtanh.f32 %v1566_v54 }
 0x172   :  { %1944 = vadd.xlane.f32.xlu0 %v1943_v52  ;;  %v2368_v52 = vshrl.u32 %v2365_v51, 7  ;;  %v4046_v22 = vpop.eup %4045  ;;  %v1825_v39 = vmul.f32 %v5052_v34, %v4044_v31  ;;  %4063 = vtanh.f32 %v1503_v58 }
 0x173   :  { %v4048_v16 = vpop.eup %4047  ;;  %v1826_v27 = vmul.f32 %v5052_v34, %v4046_v22  ;;  %4065 = vtanh.f32 %v1502_v40  ;;  %v1505_v22 = vadd.f32 %v4860_v41, %v4575_v17 }
 0x174   :  { %v1761_v47 = vmul.f32 %v5052_v34, %v4048_v16  ;;  %4067 = vtanh.f32 %v1569_v45 }
 0x175   :  { %2145 = vadd.xlane.f32.xlu1 %v2144_v24  ;;  %v1958_v24 = vsel %vm39_vm1, %v1760_v9, 0.0  ;;  %v4050_v57 = vpop.eup %4049  ;;  %v2156_v11 = vsel %vm39_vm1, %v1826_v27, 0.0  ;;  %v1568_v9 = vadd.f32 %v4856_v2, %v4575_v17  ;;  %v1504_v2 = vadd.f32 %v4864_v43, %v4575_v17 }
 0x176   :  { %2142 = vadd.xlane.f32.xlu0 %v2141_v4  ;;  %v5094_v4 = vsub.s32 %v5080_v37, %v2368_v52  ;;  %v4052_v51 = vpop.eup %4051  ;;  %v1762_v48 = vmul.f32 %v5052_v34, %v4050_v57 }
 0x177   :  { %v4054_v12 = vpop.eup %4053  ;;  %v1828_v52 = vmul.f32 %v5052_v34, %v4052_v51  ;;  %4069 = vtanh.f32 %v1568_v9 }
 0x178   :  { %v4056_v55 = vpop.eup %4055  ;;  %v1964_v18 = vsel %vm39_vm1, %v1762_v48, 0.0  ;;  %v1827_v33 = vmul.f32 %v5052_v34, %v4054_v12  ;;  %4071 = vtanh.f32 %v1505_v22 }
 0x179   :  { %1953 = vadd.xlane.f32.xlu1 %v1952_v35  ;;  %v4058_v54 = vpop.eup %4057  ;;  %v2162_v57 = vsel %vm39_vm1, %v1828_v52, 0.0  ;;  %4073 = vtanh.f32 %v1504_v2 }
 0x17a   :  { %1950 = vadd.xlane.f32.xlu0 %v1949_v38  ;;  %v2153_v38 = vsel %vm39_vm1, %v1825_v39, 0.0  ;;  %v1571_v39 = vadd.f32 %v4868_v14, %v4575_v17  ;;  %v2159_v43 = vsel %vm39_vm1, %v1827_v33, 0.0  ;;  %v1570_v14 = vadd.f32 %v4872_v46, %v4575_v17 }
 0x17c   :  { %4075 = vtanh.f32 %v1571_v39 }
 0x17d   :  { %2151 = vadd.xlane.f32.xlu1 %v2150_v7  ;;  %4077 = vtanh.f32 %v1570_v14 }
 0x17e   :  { %2148 = vadd.xlane.f32.xlu0 %v2147_v20  ;;  %v5085_v50 = vpop.xlane.xlu1 %2043  ;;  %v1961_v20 = vsel %vm39_vm1, %v1761_v47, 0.0 }
 0x17f   :  { %v5089_v25 = vpop.xlane.xlu0 %2040 }
 0x181   :  { %1959 = vadd.xlane.f32.xlu1 %v1958_v24 }
 0x182   :  { %1956 = vadd.xlane.f32.xlu0 %v1955_v61  ;;  %v2050_v6 = vpop.xlane.xlu1 %2049  ;;  %v4060_v61 = vpop.eup %4059 }
 0x183   :  { %v2630_v30 = vrot.slane %v2050_v6, %v5094_v4  ;;  %v2047_v35 = vpop.xlane.xlu0 %2046  ;;  %v1764_v6 = vmul.f32 %v5052_v34, %v4056_v55  ;;  %v4062_v58 = vpop.eup %4061  ;;  %v1830_v48 = vmul.f32 %v5052_v34, %v4060_v61 }
 0x184   :  { %v2626_v15 = vrot.slane %v2047_v35, %v5094_v4  ;;  %v4064_v12 = vpop.eup %4063 }
 0x185   :  { %2154 = vadd.xlane.f32.xlu1 %v2153_v38  ;;  %v2168_v39 = vsel %vm39_vm1, %v1830_v48, 0.0 }
 0x186   :  { %v2942_v7 = vsel %vm2879_vm2, %v2630_v30, %v2626_v15  ;;  %2157 = vadd.xlane.f32.xlu0 %v2156_v11  ;;  %v2056_v13 = vpop.xlane.xlu1 %2055  ;;  %v1763_v30 = vmul.f32 %v5052_v34, %v4058_v54  ;;  %v1970_v11 = vsel %vm39_vm1, %v1764_v6, 0.0 }
 0x187   :  { %v1858_v31 = vpop.xlane.xlu0 %1857  ;;  %v2638_v46 = vrot.slane %v2056_v13, %v5094_v4 }
 0x188   :  { %v2374_v41 = vrot.slane %v1858_v31, %v5094_v4  ;;  %v1967_v9 = vsel %vm39_vm1, %v1763_v30, 0.0  ;;  %v1829_v31 = vmul.f32 %v5052_v34, %v4062_v58 }
 0x189   :  { %1962 = vadd.xlane.f32.xlu1 %v1961_v20  ;;  %v4066_v20 = vpop.eup %4065 }
 0x18a   :  { %1965 = vadd.xlane.f32.xlu0 %v1964_v18  ;;  %v1864_v24 = vpop.xlane.xlu1 %1863  ;;  %v1506_v18 = vadd.f32 %v4880_v21, %v4575_v17  ;;  %v4068_v2 = vpop.eup %4067  ;;  %v1572_v21 = vadd.f32 %v4888_v26, %v4575_v17 }
 0x18b   :  { %v1855_v16 = vpop.xlane.xlu0 %1854  ;;  %v2382_v47 = vrot.slane %v1864_v24, %v5094_v4  ;;  %v1507_v24 = vadd.f32 %v4876_v5, %v4575_v17  ;;  %v4070_v61 = vpop.eup %4069  ;;  %v1509_v5 = vadd.f32 %v4892_v36, %v4575_v17 }
 0x18c   :  { %v2370_v27 = vrot.slane %v1855_v16, %v5094_v4  ;;  %v1766_v16 = vmul.f32 %v5052_v34, %v4064_v12  ;;  %4079 = vtanh.f32 %v1506_v18  ;;  %v1575_v12 = vadd.f32 %v4900_v62, %v4575_v17 }
 0x18d   :  { %2163 = vadd.xlane.f32.xlu1 %v2162_v57  ;;  %v1765_v57 = vmul.f32 %v5052_v34, %v4066_v20  ;;  %4081 = vtanh.f32 %v1507_v24  ;;  %v1574_v62 = vadd.f32 %v4904_v32, %v4575_v17 }
 0x18e   :  { %v2880_v35 = vsel %vm2879_vm2, %v2374_v41, %v2370_v27  ;;  %2160 = vadd.xlane.f32.xlu0 %v2159_v43  ;;  %v1861_v40 = vpop.xlane.xlu1 %1860  ;;  %v2165_v27 = vsel %vm39_vm1, %v1829_v31, 0.0  ;;  %v4072_v43 = vpop.eup %4071  ;;  %4083 = vtanh.f32 %v1572_v21 }
 0x18f   :  { %v2053_v15 = vpop.xlane.xlu0 %2052  ;;  %v2378_v38 = vrot.slane %v1861_v40, %v5094_v4  ;;  %v4074_v26 = vpop.eup %4073  ;;  %v1976_v40 = vsel %vm39_vm1, %v1766_v16, 0.0  ;;  %v1973_v36 = vsel %vm39_vm1, %v1765_v57, 0.0  ;;  %4085 = vtanh.f32 %v1509_v5 }
 0x190   :  { %v2634_v51 = vrot.slane %v2053_v15, %v5094_v4  ;;  %v1832_v15 = vmul.f32 %v5052_v34, %v4068_v2  ;;  %4087 = vtanh.f32 %v1575_v12  ;;  %v1577_v5 = vadd.f32 %v4916_v8, %v4575_v17 }
 0x191   :  { %v2882_v45 = vsel %vm2881_vm3, %v2378_v38, %v2880_v35  ;;  %1971 = vadd.xlane.f32.xlu1 %v1970_v11  ;;  %v4076_v38 = vpop.eup %4075 }
 0x192   :  { %v2943_v52 = vsel %vm2881_vm3, %v2634_v51, %v2942_v7  ;;  %1968 = vadd.xlane.f32.xlu0 %v1967_v9  ;;  %v2059_v55 = vpop.xlane.xlu1 %2058  ;;  %v2884_v22 = vsel %vm2883_vm4, %v2382_v47, %v2882_v45  ;;  %v1831_v47 = vmul.f32 %v5052_v34, %v4070_v61  ;;  %v1508_v51 = vadd.f32 %v4896_v28, %v4575_v17  ;;  %v4078_v31 = vpop.eup %4077 }
 0x193   :  { %v2062_v13 = vpop.xlane.xlu0 %2061  ;;  %v2944_v33 = vsel %vm2883_vm4, %v2638_v46, %v2943_v52  ;;  %v2642_v54 = vrot.slane %v2059_v55, %v5094_v4  ;;  %v2174_v52 = vsel %vm39_vm1, %v1832_v15, 0.0  ;;  %v1768_v28 = vmul.f32 %v5052_v34, %v4072_v43 }
 0x194   :  { %v2646_v7 = vrot.slane %v2062_v13, %v5094_v4  ;;  %v2171_v55 = vsel %vm39_vm1, %v1831_v47, 0.0  ;;  %4089 = vtanh.f32 %v1508_v51  ;;  %v1833_v32 = vmul.f32 %v5052_v34, %v4078_v31 }
 0x195   :  { %v2945_v41 = vsel %vm2885_vm5, %v2642_v54, %v2944_v33  ;;  %2169 = vadd.xlane.f32.xlu1 %v2168_v39  ;;  %v1511_v33 = vadd.f32 %v4908_v60, %v4575_v17  ;;  %v1982_v39 = vsel %vm39_vm1, %v1768_v28, 0.0  ;;  %v1834_v21 = vmul.f32 %v5052_v34, %v4076_v38 }
 0x196   :  { %2166 = vadd.xlane.f32.xlu0 %v2165_v27  ;;  %v1870_v6 = vpop.xlane.xlu1 %1869  ;;  %v2946_v58 = vsel %vm2887_vm6, %v2646_v7, %v2945_v41  ;;  %v4080_v16 = vpop.eup %4079  ;;  %4091 = vtanh.f32 %v1574_v62  ;;  %v1576_v38 = vadd.f32 %v4920_v10, %v4575_v17 }
 0x197   :  { %v2390_v30 = vrot.slane %v1870_v6, %v5094_v4  ;;  %v1867_v14 = vpop.xlane.xlu0 %1866  ;;  %v4082_v60 = vpop.eup %4081  ;;  %4093 = vtanh.f32 %v1511_v33  ;;  %v2180_v15 = vsel %vm39_vm1, %v1834_v21, 0.0 }
 0x198   :  { %v2386_v35 = vrot.slane %v1867_v14, %v5094_v4  ;;  %v4084_v57 = vpop.eup %4083  ;;  %v1510_v14 = vadd.f32 %v4912_v42, %v4575_v17  ;;  %v1770_v8 = vmul.f32 %v5052_v34, %v4082_v60  ;;  %4095 = vtanh.f32 %v1577_v5  ;;  %v5637_v42 = vld [vmem:[#allocation6_spill] sm:$0xff] }
 0x199   :  { %1977 = vadd.xlane.f32.xlu1 %v1976_v40  ;;  %v1769_v40 = vmul.f32 %v5052_v34, %v4080_v16  ;;  %v1513_v51 = vadd.f32 %v5637_v42, %v4575_v17  ;;  %v1835_v31 = vmul.f32 %v5052_v34, %v4084_v57 }
 0x19a   :  { %v2886_v11 = vsel %vm2885_vm5, %v2386_v35, %v2884_v22  ;;  %1974 = vadd.xlane.f32.xlu0 %v1973_v36  ;;  %v2068_v48 = vpop.xlane.xlu1 %2067  ;;  %v1767_v22 = vmul.f32 %v5052_v34, %v4074_v26  ;;  %v2177_v35 = vsel %vm39_vm1, %v1833_v32, 0.0  ;;  %4097 = vtanh.f32 %v1510_v14 }
 0x19b   :  { %v2654_v46 = vrot.slane %v2068_v48, %v5094_v4  ;;  %v2065_v45 = vpop.xlane.xlu0 %2064  ;;  %v2888_v9 = vsel %vm2887_vm6, %v2390_v30, %v2886_v11  ;;  %v4086_v30 = vpop.eup %4085  ;;  %v1988_v10 = vsel %vm39_vm1, %v1770_v8, 0.0  ;;  %4099 = vtanh.f32 %v1576_v38 }
 0x19c   :  { %v2650_v20 = vrot.slane %v2065_v45, %v5094_v4  ;;  %v1979_v61 = vsel %vm39_vm1, %v1767_v22, 0.0  ;;  %v1772_v45 = vmul.f32 %v5052_v34, %v4086_v30  ;;  %4101 = vtanh.f32 %v1513_v51 }
 0x19d   :  { %2175 = vadd.xlane.f32.xlu1 %v2174_v52 }
 0x19e   :  { %2172 = vadd.xlane.f32.xlu0 %v2171_v55  ;;  %v1876_v18 = vpop.xlane.xlu1 %1875  ;;  %v2947_v13 = vsel %vm2889_vm7, %v2650_v20, %v2946_v58  ;;  %v1578_v55 = vadd.f32 %v4936_v44, %v4575_v17  ;;  %v5638_v44 = vld [vmem:[#allocation8_spill] sm:$0xff] }
 0x19f   :  { %v2398_v54 = vrot.slane %v1876_v18, %v5094_v4  ;;  %v1873_v2 = vpop.xlane.xlu0 %1872  ;;  %v5185_v24 = vsel %vm2891_vm8, %v2654_v46, %v2947_v13  ;;  %v1985_v46 = vsel %vm39_vm1, %v1769_v40, 0.0  ;;  %v1512_v13 = vadd.f32 %v4928_v19, %v4575_v17 }
 0x1a0   :  { %v2394_v7 = vrot.slane %v1873_v2, %v5094_v4  ;;  %v1515_v16 = vadd.f32 %v5638_v44, %v4575_v17  ;;  %4103 = vtanh.f32 %v1578_v55  ;;  %v1514_v19 = vadd.f32 %v4944_v63, %v4575_v17 }
 0x1a1   :  { %1983 = vadd.xlane.f32.xlu1 %v1982_v39  ;;  %v2183_v39 = vsel %vm39_vm1, %v1835_v31, 0.0  ;;  %4105 = vtanh.f32 %v1512_v13  ;;  %v1517_v40 = vadd.f32 %v4956_v56, %v4575_v17  ;;  %v5640_v13 = vld [vmem:[#allocation12_spill] sm:$0xff] }
 0x1a2   :  { %1980 = vadd.xlane.f32.xlu0 %v1979_v61  ;;  %v2074_v41 = vpop.xlane.xlu1 %2073  ;;  %v2890_v27 = vsel %vm2889_vm7, %v2394_v7, %v2888_v9  ;;  %v4088_v9 = vpop.eup %4087  ;;  %4107 = vtanh.f32 %v1515_v16 }
 0x1a3   :  { %v2662_v6 = vrot.slane %v2074_v41, %v5094_v4  ;;  %v2071_v58 = vpop.xlane.xlu0 %2070  ;;  %v5197_v43 = vsel %vm2891_vm8, %v2398_v54, %v2890_v27  ;;  %v4090_v20 = vpop.eup %4089  ;;  %v1994_v54 = vsel %vm39_vm1, %v1772_v45, 0.0  ;;  %v1838_v2 = vmul.f32 %v5052_v34, %v4088_v9 }
 0x1a4   :  { %v2658_v26 = vrot.slane %v2071_v58, %v5094_v4  ;;  %v4092_v18 = vpop.eup %4091  ;;  %v1771_v32 = vmul.f32 %v5052_v34, %v4090_v20  ;;  %4109 = vtanh.f32 %v1514_v19  ;;  %v1582_v20 = vadd.f32 %v4968_v59, %v4575_v17 }
 0x1a5   :  { %2178 = vadd.xlane.f32.xlu1 %v2177_v35  ;;  %v4094_v7 = vpop.eup %4093  ;;  %v2192_v5 = vsel %vm39_vm1, %v1838_v2, 0.0  ;;  %v1837_v14 = vmul.f32 %v5052_v34, %v4092_v18  ;;  %4111 = vtanh.f32 %v1517_v40  ;;  %v1518_v59 = vadd.f32 %v4976_v29, %v4575_v17 }
 0x1a6   :  { %v2949_v36 = vsel %vm2879_vm2, %v2662_v6, %v2658_v26  ;;  %2181 = vadd.xlane.f32.xlu0 %v2180_v15  ;;  %v1882_v47 = vpop.xlane.xlu1 %1881  ;;  %v1774_v6 = vmul.f32 %v5052_v34, %v4094_v7  ;;  %v4096_v58 = vpop.eup %4095  ;;  %v1991_v30 = vsel %vm39_vm1, %v1771_v32, 0.0  ;;  %v1584_v29 = vadd.f32 %v4984_v1, %v4575_v17 }
 0x1a7   :  { %v2406_v11 = vrot.slane %v1882_v47, %v5094_v4  ;;  %v1879_v48 = vpop.xlane.xlu0 %1878  ;;  %v4098_v26 = vpop.eup %4097  ;;  %v1516_v47 = vadd.f32 %v4960_v23, %v4575_v17  ;;  %v2189_v56 = vsel %vm39_vm1, %v1837_v14, 0.0  ;;  %v5639_v23 = vld [vmem:[#allocation11_spill] sm:$0xff] }
 0x1a8   :  { %v2402_v12 = vrot.slane %v1879_v48, %v5094_v4  ;;  %v2000_v51 = vsel %vm39_vm1, %v1774_v6, 0.0 }
 0x1a9   :  { %1986 = vadd.xlane.f32.xlu1 %v1985_v46  ;;  %v1773_v46 = vmul.f32 %v5052_v34, %v4098_v26  ;;  %4113 = vtanh.f32 %v1516_v47 }
 0x1aa   :  { %v2893_v52 = vsel %vm2879_vm2, %v2406_v11, %v2402_v12  ;;  %1989 = vadd.xlane.f32.xlu0 %v1988_v10  ;;  %v2080_v28 = vpop.xlane.xlu1 %2079  ;;  %v1840_v11 = vmul.f32 %v5052_v34, %v4096_v58  ;;  %v1583_v10 = vadd.f32 %v5639_v23, %v4575_v17 }
 0x1ab   :  { %v2670_v22 = vrot.slane %v2080_v28, %v5094_v4  ;;  %v2077_v62 = vpop.xlane.xlu0 %2076 }
 0x1ac   :  { %v2666_v33 = vrot.slane %v2077_v62, %v5094_v4  ;;  %4115 = vtanh.f32 %v1583_v10  ;;  %v1523_v10 = vadd.f32 %v5004_v3, %v4575_v17  ;;  %v5644_v3 = vld [vmem:[#allocation13_spill] sm:$0xff] }
 0x1ad   :  { %1995 = vadd.xlane.f32.xlu1 %v1994_v54  ;;  %4117 = vtanh.f32 %v1582_v20 }
 0x1ae   :  { %v2950_v61 = vsel %vm2881_vm3, %v2666_v33, %v2949_v36  ;;  %2184 = vadd.xlane.f32.xlu0 %v2183_v39  ;;  %v1888_v21 = vpop.xlane.xlu1 %1887  ;;  %v4100_v36 = vpop.eup %4099  ;;  %v1519_v33 = vadd.f32 %v5640_v13, %v4575_v17 }
 0x1af   :  { %v2414_v60 = vrot.slane %v1888_v21, %v5094_v4  ;;  %v1885_v41 = vpop.xlane.xlu0 %1884  ;;  %v2951_v27 = vsel %vm2883_vm4, %v2670_v22, %v2950_v61  ;;  %v4102_v48 = vpop.eup %4101  ;;  %v1997_v22 = vsel %vm39_vm1, %v1773_v46, 0.0  ;;  %v1839_v62 = vmul.f32 %v5052_v34, %v4100_v36 }
 0x1b0   :  { %v2410_v57 = vrot.slane %v1885_v41, %v5094_v4  ;;  %v1776_v28 = vmul.f32 %v5052_v34, %v4102_v48  ;;  %v4104_v55 = vpop.eup %4103  ;;  %4119 = vtanh.f32 %v1519_v33  ;;  %v1585_v33 = vadd.f32 %v5644_v3, %v4575_v17 }
 0x1b1   :  { %2193 = vadd.xlane.f32.xlu1 %v2192_v5  ;;  %v4106_v18 = vpop.eup %4105  ;;  %v1841_v44 = vmul.f32 %v5052_v34, %v4104_v55  ;;  %v2195_v21 = vsel %vm39_vm1, %v1839_v62, 0.0  ;;  %4121 = vtanh.f32 %v1518_v59 }
 0x1b2   :  { %v2894_v63 = vsel %vm2881_vm3, %v2410_v57, %v2893_v52  ;;  %1992 = vadd.xlane.f32.xlu0 %v1991_v30  ;;  %v2083_v35 = vpop.xlane.xlu1 %2082  ;;  %v2198_v52 = vsel %vm39_vm1, %v1840_v11, 0.0  ;;  %v4108_v7 = vpop.eup %4107  ;;  %v2006_v32 = vsel %vm39_vm1, %v1776_v28, 0.0  ;;  %v1775_v19 = vmul.f32 %v5052_v34, %v4106_v18 }
 0x1b3   :  { %v2674_v15 = vrot.slane %v2083_v35, %v5094_v4  ;;  %v2086_v8 = vpop.xlane.xlu0 %2085  ;;  %v2895_v38 = vsel %vm2883_vm4, %v2414_v60, %v2894_v63  ;;  %v4110_v16 = vpop.eup %4109  ;;  %v2201_v30 = vsel %vm39_vm1, %v1841_v44, 0.0  ;;  %v1778_v35 = vmul.f32 %v5052_v34, %v4108_v7 }
 0x1b4   :  { %v2678_v42 = vrot.slane %v2086_v8, %v5094_v4  ;;  %v1777_v14 = vmul.f32 %v5052_v34, %v4110_v16  ;;  %v4112_v26 = vpop.eup %4111  ;;  %v2003_v63 = vsel %vm39_vm1, %v1775_v19, 0.0  ;;  %4123 = vtanh.f32 %v1584_v29 }
 0x1b5   :  { %v2952_v12 = vsel %vm2885_vm5, %v2674_v15, %v2951_v27  ;;  %2001 = vadd.xlane.f32.xlu1 %v2000_v51  ;;  %v5641_v27 = vld [vmem:[#allocation14_spill] sm:$0xff]  ;;  %v4114_v40 = vpop.eup %4113  ;;  %v1780_v48 = vmul.f32 %v5052_v34, %v4112_v26 }
 0x1b6   :  { %2190 = vadd.xlane.f32.xlu0 %v2189_v56  ;;  %v2092_v45 = vpop.xlane.xlu1 %2091  ;;  %v2953_v9 = vsel %vm2887_vm6, %v2678_v42, %v2952_v12  ;;  %v1521_v57 = vadd.f32 %v5641_v27, %v4575_v17  ;;  %v1520_v42 = vadd.f32 %v4992_v49, %v4575_v17  ;;  %v2009_v11 = vsel %vm39_vm1, %v1777_v14, 0.0  ;;  %v4116_v12 = vpop.eup %4115 }
 0x1b7   :  { %v1894_v31 = vpop.xlane.xlu0 %1893  ;;  %v2686_v1 = vrot.slane %v2092_v45, %v5094_v4  ;;  %v2012_v56 = vsel %vm39_vm1, %v1778_v35, 0.0  ;;  %v1779_v46 = vmul.f32 %v5052_v34, %v4114_v40  ;;  %v5642_v45 = vld [vmem:[#allocation5_spill] sm:$0xff]  ;;  %v1846_v28 = vmul.f32 %v5052_v34, %v4116_v12 }
 0x1b8   :  { %v2422_v61 = vrot.slane %v1894_v31, %v5094_v4  ;;  %4125 = vtanh.f32 %v1521_v57 }
 0x1b9   :  { %2199 = vadd.xlane.f32.xlu1 %v2198_v52  ;;  %v2018_v52 = vsel %vm39_vm1, %v1780_v48, 0.0  ;;  %v2015_v18 = vsel %vm39_vm1, %v1779_v46, 0.0  ;;  %v2216_v16 = vsel %vm39_vm1, %v1846_v28, 0.0 }
 0x1ba   :  { %1998 = vadd.xlane.f32.xlu0 %v1997_v22  ;;  %v5264_v54 = vpop.xlane.xlu1 %1899  ;;  %v5643_v22 = vld [vmem:[#allocation7_spill] sm:$0xff] }
 0x1bb   :  { %v1891_v2 = vpop.xlane.xlu0 %1890  ;;  %v1579_v62 = vadd.f32 %v5643_v22, %v4575_v17 }
 0x1bc   :  { %v2418_v39 = vrot.slane %v1891_v2, %v5094_v4 }
 0x1bd   :  { %2007 = vadd.xlane.f32.xlu1 %v2006_v32 }
 0x1be   :  { %v2896_v60 = vsel %vm2885_vm5, %v2418_v39, %v2895_v38  ;;  %2196 = vadd.xlane.f32.xlu0 %v2195_v21  ;;  %v5277_v41 = vpop.xlane.xlu1 %2097  ;;  %v1522_v38 = vadd.f32 %v5008_v53, %v4575_v17  ;;  %v4118_v53 = vpop.eup %4117 }
 0x1bf   :  { %v2089_v5 = vpop.xlane.xlu0 %2088  ;;  %v2897_v6 = vsel %vm2887_vm6, %v2422_v61, %v2896_v60  ;;  %v4120_v20 = vpop.eup %4119  ;;  %v1845_v13 = vmul.f32 %v5052_v34, %v4118_v53  ;;  %v5645_v60 = vld [vmem:[#allocation10_spill] sm:$0xff]  ;;  %v5648_v53 = vld [vmem:[#allocation15_spill] sm:$0xff] }
 0x1c0   :  { %v2682_v58 = vrot.slane %v2089_v5, %v5094_v4  ;;  %4127 = vtanh.f32 %v1522_v38  ;;  %v4122_v55 = vpop.eup %4121  ;;  %v1782_v7 = vmul.f32 %v5052_v34, %v4120_v20  ;;  %v1580_v27 = vadd.f32 %v5645_v60, %v4575_v17 }
 0x1c1   :  { %2202 = vadd.xlane.f32.xlu1 %v2201_v30  ;;  %4129 = vtanh.f32 %v1520_v42  ;;  %v4124_v39 = vpop.eup %4123  ;;  %v1781_v61 = vmul.f32 %v5052_v34, %v4122_v55  ;;  %v2213_v29 = vsel %vm39_vm1, %v1845_v13, 0.0  ;;  %v2694_v30 = vrot.slane %v5277_v41, %v5094_v4 }
 0x1c2   :  { %2004 = vadd.xlane.f32.xlu0 %v2003_v63  ;;  %v1906_v15 = vpop.xlane.xlu1 %1905  ;;  %v2954_v8 = vsel %vm2889_vm7, %v2682_v58, %v2953_v9  ;;  %v1573_v9 = vadd.f32 %v5642_v45, %v4575_v17  ;;  %v4126_v21 = vpop.eup %4125  ;;  %v1847_v42 = vmul.f32 %v5052_v34, %v4124_v39  ;;  %v1587_v45 = vadd.f32 %v5648_v53, %v4575_v17 }
 0x1c3   :  { %v1897_v36 = vpop.xlane.xlu0 %1896  ;;  %v5292_v47 = vsel %vm2891_vm8, %v2686_v1, %v2954_v8  ;;  %v2438_v32 = vrot.slane %v1906_v15, %v5094_v4  ;;  %v2024_v1 = vsel %vm39_vm1, %v1782_v7, 0.0  ;;  %v2021_v40 = vsel %vm39_vm1, %v1781_v61, 0.0 }
 0x1c4   :  { %v2426_v51 = vrot.slane %v1897_v36, %v5094_v4  ;;  %4131 = vtanh.f32 %v1573_v9  ;;  %v1784_v15 = vmul.f32 %v5052_v34, %v4126_v21 }
 0x1c5   :  { %2010 = vadd.xlane.f32.xlu1 %v2009_v11  ;;  %4133 = vtanh.f32 %v1523_v10  ;;  %v5647_v11 = vld [vmem:[#allocation9_spill] sm:$0xff] }
 0x1c6   :  { %2013 = vadd.xlane.f32.xlu0 %v2012_v56  ;;  %v2104_v23 = vpop.xlane.xlu1 %2103  ;;  %v5304_v49 = vsel %vm2889_vm7, %v2426_v51, %v2897_v6  ;;  %4135 = vtanh.f32 %v1579_v62  ;;  %v5646_v6 = vld [vmem:[#allocation16_spill] sm:$0xff]  ;;  %v1581_v48 = vadd.f32 %v5647_v11, %v4575_v17  ;;  %v2219_v62 = vsel %vm39_vm1, %v1847_v42, 0.0 }
 0x1c7   :  { %v2095_v31 = vpop.xlane.xlu0 %2094  ;;  %4137 = vtanh.f32 %v1585_v33  ;;  %v1586_v58 = vadd.f32 %v5646_v6, %v4575_v17  ;;  %v2702_v36 = vrot.slane %v2104_v23, %v5094_v4 }
 0x1c8   :  { %v2690_v19 = vrot.slane %v2095_v31, %v5094_v4 }
 0x1c9   :  { %2019 = vadd.xlane.f32.xlu1 %v2018_v52  ;;  %4139 = vtanh.f32 %v1586_v58  ;;  %v2030_v52 = vsel %vm39_vm1, %v1784_v15, 0.0 }
 0x1ca   :  { %2016 = vadd.xlane.f32.xlu0 %v2015_v18  ;;  %v1912_v59 = vpop.xlane.xlu1 %1911  ;;  %v4128_v8 = vpop.eup %4127  ;;  %v2956_v38 = vsel %vm2879_vm2, %v2694_v30, %v2690_v19  ;;  %4141 = vtanh.f32 %v1580_v27 }
 0x1cb   :  { %v1903_v2 = vpop.xlane.xlu0 %1902  ;;  %v2446_v63 = vrot.slane %v1912_v59, %v5094_v4  ;;  %v4130_v51 = vpop.eup %4129  ;;  %v1785_v28 = vmul.f32 %v5052_v34, %v4128_v8  ;;  %4143 = vtanh.f32 %v1581_v48  ;;  %v1589_v59 = vadd.f32 %v5012_v0, %v4575_v17 }
 0x1cc   :  { %v2434_v44 = vrot.slane %v1903_v2, %v5094_v4  ;;  %v1783_v18 = vmul.f32 %v5052_v34, %v4130_v51  ;;  %4145 = vtanh.f32 %v1587_v45 }
 0x1cd   :  { %2217 = vadd.xlane.f32.xlu1 %v2216_v16  ;;  %v2033_v61 = vsel %vm39_vm1, %v1785_v28, 0.0  ;;  %4147 = vtanh.f32 %v1589_v59 }
 0x1ce   :  { %v2900_v57 = vsel %vm2879_vm2, %v2438_v32, %v2434_v44  ;;  %2214 = vadd.xlane.f32.xlu0 %v2213_v29  ;;  %v1909_v5 = vpop.xlane.xlu1 %1908  ;;  %v4132_v31 = vpop.eup %4131  ;;  %v5649_v32 = vld [vmem:[#allocation17_spill] sm:$0xff]  ;;  %v2027_v29 = vsel %vm39_vm1, %v1783_v18, 0.0 }
 0x1cf   :  { %v2101_v14 = vpop.xlane.xlu0 %2100  ;;  %v2442_v26 = vrot.slane %v1909_v5, %v5094_v4  ;;  %v4134_v55 = vpop.eup %4133  ;;  %v1588_v44 = vadd.f32 %v5649_v32, %v4575_v17  ;;  %v1836_v21 = vmul.f32 %v5052_v34, %v4132_v31 }
 0x1d0   :  { %v2698_v35 = vrot.slane %v2101_v14, %v5094_v4  ;;  %v4136_v33 = vpop.eup %4135  ;;  %v1786_v0 = vmul.f32 %v5052_v34, %v4134_v55 }
 0x1d1   :  { %v2901_v41 = vsel %vm2881_vm3, %v2442_v26, %v2900_v57  ;;  %2025 = vadd.xlane.f32.xlu1 %v2024_v1  ;;  %v4138_v39 = vpop.eup %4137  ;;  %4149 = vtanh.f32 %v1588_v44  ;;  %v2186_v6 = vsel %vm39_vm1, %v1836_v21, 0.0  ;;  %v1842_v26 = vmul.f32 %v5052_v34, %v4136_v33 }
 0x1d2   :  { %v2957_v12 = vsel %vm2881_vm3, %v2698_v35, %v2956_v38  ;;  %2022 = vadd.xlane.f32.xlu0 %v2021_v40  ;;  %v2107_v56 = vpop.xlane.xlu1 %2106  ;;  %v2902_v46 = vsel %vm2883_vm4, %v2446_v63, %v2901_v41  ;;  %v1848_v58 = vmul.f32 %v5052_v34, %v4138_v39  ;;  %v2036_v14 = vsel %vm39_vm1, %v1786_v0, 0.0 }
 0x1d3   :  { %v2110_v9 = vpop.xlane.xlu0 %2109  ;;  %v2958_v23 = vsel %vm2883_vm4, %v2702_v36, %v2957_v12  ;;  %v2706_v10 = vrot.slane %v2107_v56, %v5094_v4  ;;  %v4140_v30 = vpop.eup %4139  ;;  %v2204_v42 = vsel %vm39_vm1, %v1842_v26, 0.0 }
 0x1d4   :  { %v2710_v20 = vrot.slane %v2110_v9, %v5094_v4  ;;  %v4142_v1 = vpop.eup %4141  ;;  %v2222_v38 = vsel %vm39_vm1, %v1848_v58, 0.0  ;;  %v1849_v36 = vmul.f32 %v5052_v34, %v4140_v30 }
 0x1d5   :  { %v2959_v22 = vsel %vm2885_vm5, %v2706_v10, %v2958_v23  ;;  %2031 = vadd.xlane.f32.xlu1 %v2030_v52  ;;  %v4144_v8 = vpop.eup %4143  ;;  %v1843_v51 = vmul.f32 %v5052_v34, %v4142_v1 }
 0x1d6   :  { %2220 = vadd.xlane.f32.xlu0 %v2219_v62  ;;  %v1915_v13 = vpop.xlane.xlu1 %1914  ;;  %v2960_v3 = vsel %vm2887_vm6, %v2710_v20, %v2959_v22  ;;  %v4146_v41 = vpop.eup %4145  ;;  %v1844_v23 = vmul.f32 %v5052_v34, %v4144_v8 }
 0x1d7   :  { %v1918_v2 = vpop.xlane.xlu0 %1917  ;;  %v2450_v7 = vrot.slane %v1915_v13, %v5094_v4  ;;  %v1850_v53 = vmul.f32 %v5052_v34, %v4146_v41  ;;  %v4148_v45 = vpop.eup %4147  ;;  %v2207_v9 = vsel %vm39_vm1, %v1843_v51, 0.0 }
 0x1d8   :  { %v2454_v16 = vrot.slane %v1918_v2, %v5094_v4  ;;  %v1852_v55 = vmul.f32 %v5052_v34, %v4148_v45  ;;  %v2210_v22 = vsel %vm39_vm1, %v1844_v23, 0.0 }
 0x1d9   :  { %v2903_v19 = vsel %vm2885_vm5, %v2450_v7, %v2902_v46  ;;  %2034 = vadd.xlane.f32.xlu1 %v2033_v61  ;;  %v2225_v46 = vsel %vm39_vm1, %v1849_v36, 0.0  ;;  %v2228_v28 = vsel %vm39_vm1, %v1850_v53, 0.0 }
 0x1da   :  { %2028 = vadd.xlane.f32.xlu0 %v2027_v29  ;;  %v2116_v60 = vpop.xlane.xlu1 %2115  ;;  %v5367_v27 = vsel %vm2887_vm6, %v2454_v16, %v2903_v19  ;;  %v2234_v59 = vsel %vm39_vm1, %v1852_v55, 0.0 }
 0x1db   :  { %v2113_v17 = vpop.xlane.xlu0 %2112  ;;  %v2718_v57 = vrot.slane %v2116_v60, %v5094_v4  ;;  %v4150_v10 = vpop.eup %4149 }
 0x1dc   :  { %v2714_v5 = vrot.slane %v2113_v17, %v5094_v4  ;;  %v1851_v62 = vmul.f32 %v5052_v34, %v4150_v10 }
 0x1dd   :  { %2187 = vadd.xlane.f32.xlu1 %v2186_v6 }
 0x1de   :  { %2037 = vadd.xlane.f32.xlu0 %v2036_v14  ;;  %v5375_v63 = vpop.xlane.xlu1 %1923  ;;  %v2961_v35 = vsel %vm2889_vm7, %v2714_v5, %v2960_v3  ;;  %v2231_v2 = vsel %vm39_vm1, %v1851_v62, 0.0 }
 0x1df   :  { %v5378_v40 = vpop.xlane.xlu0 %1920  ;;  %v5381_v15 = vsel %vm2891_vm8, %v2718_v57, %v2961_v35 }
 0x1e1   :  { %2223 = vadd.xlane.f32.xlu1 %v2222_v38 }
 0x1e2   :  { %2205 = vadd.xlane.f32.xlu0 %v2204_v42  ;;  %v2122_v11 = vpop.xlane.xlu1 %2121 }
 0x1e3   :  { %v2726_v48 = vrot.slane %v2122_v11, %v5094_v4  ;;  %v2119_v12 = vpop.xlane.xlu0 %2118 }
 0x1e4   :  { %v2722_v56 = vrot.slane %v2119_v12, %v5094_v4 }
 0x1e5   :  { %2226 = vadd.xlane.f32.xlu1 %v2225_v46 }
 0x1e6   :  { %v2963_v31 = vsel %vm2879_vm2, %v2726_v48, %v2722_v56  ;;  %2208 = vadd.xlane.f32.xlu0 %v2207_v9  ;;  %v5394_v20 = vpop.xlane.xlu1 %1929 }
 0x1e7   :  { %v5396_v52 = vpop.xlane.xlu0 %1926 }
 0x1e8   :  { %v2466_v55 = vrot.slane %v5396_v52, %v5094_v4 }
 0x1e9   :  { %2229 = vadd.xlane.f32.xlu1 %v2228_v28  ;;  %v2470_v28 = vrot.slane %v5394_v20, %v5094_v4 }
 0x1ea   :  { %2211 = vadd.xlane.f32.xlu0 %v2210_v22  ;;  %v2128_v18 = vpop.xlane.xlu1 %2127 }
 0x1eb   :  { %v2734_v13 = vrot.slane %v2128_v18, %v5094_v4  ;;  %v2125_v3 = vpop.xlane.xlu0 %2124 }
 0x1ec   :  { %v2730_v33 = vrot.slane %v2125_v3, %v5094_v4 }
 0x1ed   :  { %2235 = vadd.xlane.f32.xlu1 %v2234_v59  ;;  %v2458_v59 = vrot.slane %v5378_v40, %v5094_v4 }
 0x1ee   :  { %v2964_v7 = vsel %vm2881_vm3, %v2730_v33, %v2963_v31  ;;  %2232 = vadd.xlane.f32.xlu0 %v2231_v2  ;;  %v5407_v39 = vpop.xlane.xlu1 %1935  ;;  %v2430_v33 = vrot.slane %v5264_v54, %v5094_v4  ;;  %v2907_v2 = vsel %vm2879_vm2, %v2470_v28, %v2466_v55 }
 0x1ef   :  { %v1933_v32 = vpop.xlane.xlu0 %1932  ;;  %v2965_v34 = vsel %vm2883_vm4, %v2734_v13, %v2964_v7  ;;  %v2478_v20 = vrot.slane %v5407_v39, %v5094_v4 }
 0x1f0   :  { %v2474_v62 = vrot.slane %v1933_v32, %v5094_v4  ;;  %v2899_v39 = vsel %vm2891_vm8, %v2430_v33, %v5304_v49 }
 0x1f2   :  { %v2131_v44 = vpop.xlane.xlu1 %2130  ;;  %v2908_v52 = vsel %vm2881_vm3, %v2474_v62, %v2907_v2 }
 0x1f3   :  { %v2738_v16 = vrot.slane %v2131_v44, %v5094_v4  ;;  %v2134_v61 = vpop.xlane.xlu0 %2133 }
 0x1f4   :  { %v2742_v21 = vrot.slane %v2134_v61, %v5094_v4 }
 0x1f5   :  { %v2966_v19 = vsel %vm2885_vm5, %v2738_v16, %v2965_v34 }
 0x1f6   :  { %v2967_v29 = vsel %vm2887_vm6, %v2742_v21, %v2966_v19  ;;  %v1939_v0 = vpop.xlane.xlu1 %1938  ;;  %v2462_v21 = vrot.slane %v5375_v63, %v5094_v4 }
 0x1f7   :  { %v5414_v60 = vpop.xlane.xlu0 %1941  ;;  %v2482_v7 = vrot.slane %v1939_v0, %v5094_v4  ;;  %v2905_v0 = vsel %vm2889_vm7, %v2458_v59, %v5367_v27 }
 0x1f8   :  { %v2486_v19 = vrot.slane %v5414_v60, %v5094_v4 }
 0x1fa   :  { %v2140_v17 = vpop.xlane.xlu1 %2139 }
 0x1fb   :  { %v2137_v57 = vpop.xlane.xlu0 %2136  ;;  %v2750_v5 = vrot.slane %v2140_v17, %v5094_v4 }
 0x1fc   :  { %v2746_v6 = vrot.slane %v2137_v57, %v5094_v4 }
 0x1fe   :  { %v5418_v58 = vpop.xlane.xlu1 %1947  ;;  %v2968_v30 = vsel %vm2889_vm7, %v2746_v6, %v2967_v29  ;;  %v2909_v29 = vsel %vm2883_vm4, %v2478_v20, %v2908_v52 }
 0x1ff   :  { %v5421_v14 = vpop.xlane.xlu0 %1944  ;;  %v5424_v26 = vsel %vm2891_vm8, %v2750_v5, %v2968_v30  ;;  %v2910_v17 = vsel %vm2885_vm5, %v2482_v7, %v2909_v29 }
 0x200   :  { %v2490_v63 = vrot.slane %v5421_v14, %v5094_v4  ;;  %v2911_v14 = vsel %vm2887_vm6, %v2486_v19, %v2910_v17 }
 0x202   :  { %v2146_v1 = vpop.xlane.xlu1 %2145 }
 0x203   :  { %v2758_v35 = vrot.slane %v2146_v1, %v5094_v4  ;;  %v2143_v8 = vpop.xlane.xlu0 %2142  ;;  %v2906_v1 = vsel %vm2891_vm8, %v2462_v21, %v2905_v0 }
 0x204   :  { %v2754_v38 = vrot.slane %v2143_v8, %v5094_v4 }
 0x206   :  { %v2970_v36 = vsel %vm2879_vm2, %v2758_v35, %v2754_v38  ;;  %v1954_v41 = vpop.xlane.xlu1 %1953  ;;  %v2494_v35 = vrot.slane %v5418_v58, %v5094_v4 }
 0x207   :  { %v1951_v42 = vpop.xlane.xlu0 %1950  ;;  %v2502_v32 = vrot.slane %v1954_v41, %v5094_v4 }
 0x208   :  { %v2498_v34 = vrot.slane %v1951_v42, %v5094_v4 }
 0x20a   :  { %v2152_v51 = vpop.xlane.xlu1 %2151 }
 0x20b   :  { %v2766_v11 = vrot.slane %v2152_v51, %v5094_v4  ;;  %v2149_v48 = vpop.xlane.xlu0 %2148 }
 0x20c   :  { %v2762_v12 = vrot.slane %v2149_v48, %v5094_v4  ;;  %v2912_v48 = vsel %vm2889_vm7, %v2490_v63, %v2911_v14 }
 0x20e   :  { %v2971_v56 = vsel %vm2881_vm3, %v2762_v12, %v2970_v36  ;;  %v1960_v46 = vpop.xlane.xlu1 %1959 }
 0x20f   :  { %v1957_v53 = vpop.xlane.xlu0 %1956  ;;  %v2972_v45 = vsel %vm2883_vm4, %v2766_v11, %v2971_v56  ;;  %v2510_v57 = vrot.slane %v1960_v46, %v5094_v4 }
 0x210   :  { %v2506_v16 = vrot.slane %v1957_v53, %v5094_v4  ;;  %v2913_v53 = vsel %vm2891_vm8, %v2494_v35, %v2912_v48 }
 0x212   :  { %v2155_v9 = vpop.xlane.xlu1 %2154 }
 0x213   :  { %v2770_v23 = vrot.slane %v2155_v9, %v5094_v4  ;;  %v2158_v10 = vpop.xlane.xlu0 %2157 }
 0x214   :  { %v2774_v31 = vrot.slane %v2158_v10, %v5094_v4 }
 0x215   :  { %v2973_v22 = vsel %vm2885_vm5, %v2770_v23, %v2972_v45 }
 0x216   :  { %v2974_v18 = vsel %vm2887_vm6, %v2774_v31, %v2973_v22  ;;  %v1963_v13 = vpop.xlane.xlu1 %1962 }
 0x217   :  { %v1966_v3 = vpop.xlane.xlu0 %1965  ;;  %v2514_v60 = vrot.slane %v1963_v13, %v5094_v4 }
 0x218   :  { %v2518_v8 = vrot.slane %v1966_v3, %v5094_v4 }
 0x21a   :  { %v2164_v44 = vpop.xlane.xlu1 %2163 }
 0x21b   :  { %v2161_v54 = vpop.xlane.xlu0 %2160  ;;  %v2782_v61 = vrot.slane %v2164_v44, %v5094_v4  ;;  %3014 = vxpose.xlu0.b32.start [1/16] (narrow) %v5197_v43, 8  ;;  %v2914_v43 = vsel %vm2879_vm2, %v2502_v32, %v2498_v34 }
 0x21c   :  { %v2778_v40 = vrot.slane %v2161_v54, %v5094_v4  ;;  %v2915_v6 = vsel %vm2881_vm3, %v2506_v16, %v2914_v43 }
 0x21d   :  { %v2916_v38 = vsel %vm2883_vm4, %v2510_v57, %v2915_v6 }
 0x21e   :  { %v1972_v5 = vpop.xlane.xlu1 %1971  ;;  %v2975_v49 = vsel %vm2889_vm7, %v2778_v40, %v2974_v18  ;;  %v2917_v41 = vsel %vm2885_vm5, %v2514_v60, %v2916_v38 }
 0x21f   :  { %v1969_v30 = vpop.xlane.xlu0 %1968  ;;  %3015 = vxpose.xlu0.b32.cont [2/16] (narrow) %v2899_v39, 8  ;;  %v5475_v27 = vsel %vm2891_vm8, %v2782_v61, %v2975_v49  ;;  %v2526_v58 = vrot.slane %v1972_v5, %v5094_v4  ;;  %v2918_v45 = vsel %vm2887_vm6, %v2518_v8, %v2917_v41 }
 0x220   :  { %v2522_v42 = vrot.slane %v1969_v30, %v5094_v4 }
 0x222   :  { %v2170_v36 = vpop.xlane.xlu1 %2169  ;;  %v2919_v23 = vsel %vm2889_vm7, %v2522_v42, %v2918_v45 }
 0x223   :  { %v2790_v51 = vrot.slane %v2170_v36, %v5094_v4  ;;  %v2167_v11 = vpop.xlane.xlu0 %2166  ;;  %3016 = vxpose.xlu0.b32.cont [3/16] (narrow) %v2906_v1, 8  ;;  %v2920_v31 = vsel %vm2891_vm8, %v2526_v58, %v2919_v23 }
 0x224   :  { %v2786_v12 = vrot.slane %v2167_v11, %v5094_v4 }
 0x226   :  { %v2977_v56 = vsel %vm2879_vm2, %v2790_v51, %v2786_v12  ;;  %v1978_v46 = vpop.xlane.xlu1 %1977 }
 0x227   :  { %v1975_v9 = vpop.xlane.xlu0 %1974  ;;  %3017 = vxpose.xlu0.b32.cont [4/16] (narrow) %v2913_v53, 8  ;;  %v2534_v52 = vrot.slane %v1978_v46, %v5094_v4 }
 0x228   :  { %v2530_v7 = vrot.slane %v1975_v9, %v5094_v4 }
 0x22a   :  { %v2176_v10 = vpop.xlane.xlu1 %2175  ;;  %v2921_v61 = vsel %vm2879_vm2, %v2534_v52, %v2530_v7 }
 0x22b   :  { %v2798_v28 = vrot.slane %v2176_v10, %v5094_v4  ;;  %v2173_v55 = vpop.xlane.xlu0 %2172  ;;  %3018 = vxpose.xlu0.b32.cont [5/16] (narrow) %v2920_v31, 8 }
 0x22c   :  { %v2794_v22 = vrot.slane %v2173_v55, %v5094_v4 }
 0x22e   :  { %v2978_v62 = vsel %vm2881_vm3, %v2794_v22, %v2977_v56  ;;  %v1984_v18 = vpop.xlane.xlu1 %1983 }
 0x22f   :  { %v1981_v13 = vpop.xlane.xlu0 %1980  ;;  %v2979_v3 = vsel %vm2883_vm4, %v2798_v28, %v2978_v62  ;;  %v2542_v40 = vrot.slane %v1984_v18, %v5094_v4 }
 0x230   :  { %v2538_v34 = vrot.slane %v1981_v13, %v5094_v4 }
 0x232   :  { %v2179_v33 = vpop.xlane.xlu1 %2178  ;;  %v2922_v39 = vsel %vm2881_vm3, %v2538_v34, %v2921_v61 }
 0x233   :  { %v2802_v59 = vrot.slane %v2179_v33, %v5094_v4  ;;  %v2182_v2 = vpop.xlane.xlu0 %2181  ;;  %v2923_v43 = vsel %vm2883_vm4, %v2542_v40, %v2922_v39 }
 0x234   :  { %v2806_v20 = vrot.slane %v2182_v2, %v5094_v4 }
 0x235   :  { %v2980_v32 = vsel %vm2885_vm5, %v2802_v59, %v2979_v3 }
 0x236   :  { %v2981_v44 = vsel %vm2887_vm6, %v2806_v20, %v2980_v32  ;;  %v1987_v16 = vpop.xlane.xlu1 %1986 }
 0x237   :  { %v1990_v54 = vpop.xlane.xlu0 %1989  ;;  %v2546_v21 = vrot.slane %v1987_v16, %v5094_v4 }
 0x238   :  { %v2550_v17 = vrot.slane %v1990_v54, %v5094_v4 }
 0x239   :  { %v2924_v57 = vsel %vm2885_vm5, %v2546_v21, %v2923_v43 }
 0x23a   :  { %v1996_v19 = vpop.xlane.xlu1 %1995  ;;  %v2925_v30 = vsel %vm2887_vm6, %v2550_v17, %v2924_v57 }
 0x23b   :  { %v2185_v29 = vpop.xlane.xlu0 %2184  ;;  %v2558_v60 = vrot.slane %v1996_v19, %v5094_v4 }
 0x23c   :  { %v2810_v0 = vrot.slane %v2185_v29, %v5094_v4 }
 0x23e   :  { %v2194_v5 = vpop.xlane.xlu1 %2193  ;;  %v5514_v49 = vsel %vm2889_vm7, %v2810_v0, %v2981_v44 }
 0x23f   :  { %v1993_v63 = vpop.xlane.xlu0 %1992  ;;  %v2822_v36 = vrot.slane %v2194_v5, %v5094_v4 }
 0x240   :  { %v2554_v6 = vrot.slane %v1993_v63, %v5094_v4 }
 0x242   :  { %v2002_v1 = vpop.xlane.xlu1 %2001  ;;  %v2926_v35 = vsel %vm2889_vm7, %v2554_v6, %v2925_v30  ;;  %v2618_v6 = vrot.slane %v5089_v25, %v5094_v4 }
 0x243   :  { %v2191_v8 = vpop.xlane.xlu0 %2190  ;;  %v2927_v38 = vsel %vm2891_vm8, %v2558_v60, %v2926_v35  ;;  %v2566_v56 = vrot.slane %v2002_v1, %v5094_v4  ;;  %v2622_v60 = vrot.slane %v5085_v50, %v5094_v4 }
 0x244   :  { %v2818_v14 = vrot.slane %v2191_v8, %v5094_v4  ;;  %3019 = vxpose.xlu0.b32.cont [6/16] (narrow) %v2927_v38, 8 }
 0x246   :  { %v5524_v41 = vsel %vm2879_vm2, %v2822_v36, %v2818_v14  ;;  %v5526_v42 = vpop.xlane.xlu1 %2199 }
 0x247   :  { %v1999_v51 = vpop.xlane.xlu0 %1998 }
 0x248   :  { %v2562_v12 = vrot.slane %v1999_v51, %v5094_v4 }
 0x24a   :  { %v2008_v11 = vpop.xlane.xlu1 %2007  ;;  %v2928_v45 = vsel %vm2879_vm2, %v2566_v56, %v2562_v12 }
 0x24b   :  { %v2197_v48 = vpop.xlane.xlu0 %2196  ;;  %v2574_v10 = vrot.slane %v2008_v11, %v5094_v4 }
 0x24c   :  { %v2826_v50 = vrot.slane %v2197_v48, %v5094_v4 }
 0x24e   :  { %v5529_v58 = vpop.xlane.xlu1 %2202  ;;  %v2985_v12 = vsel %vm2881_vm3, %v2826_v50, %v5524_v41 }
 0x24f   :  { %v2005_v46 = vpop.xlane.xlu0 %2004 }
 0x250   :  { %v2570_v53 = vrot.slane %v2005_v46, %v5094_v4 }
 0x252   :  { %v2929_v9 = vsel %vm2881_vm3, %v2570_v53, %v2928_v45  ;;  %v2011_v23 = vpop.xlane.xlu1 %2010 }
 0x253   :  { %v2014_v31 = vpop.xlane.xlu0 %2013  ;;  %v2578_v28 = vrot.slane %v2011_v23, %v5094_v4  ;;  %v2930_v22 = vsel %vm2883_vm4, %v2574_v10, %v2929_v9 }
 0x254   :  { %v2582_v55 = vrot.slane %v2014_v31, %v5094_v4 }
 0x255   :  { %v2931_v62 = vsel %vm2885_vm5, %v2578_v28, %v2930_v22 }
 0x256   :  { %v2020_v18 = vpop.xlane.xlu1 %2019  ;;  %v2932_v59 = vsel %vm2887_vm6, %v2582_v55, %v2931_v62 }
 0x257   :  { %v2590_v13 = vrot.slane %v2020_v18, %v5094_v4  ;;  %v2017_v3 = vpop.xlane.xlu0 %2016 }
 0x258   :  { %v2586_v33 = vrot.slane %v2017_v3, %v5094_v4 }
 0x25a   :  { %v2218_v2 = vpop.xlane.xlu1 %2217  ;;  %v2933_v20 = vsel %vm2889_vm7, %v2586_v33, %v2932_v59 }
 0x25b   :  { %v2215_v52 = vpop.xlane.xlu0 %2214  ;;  %v2934_v7 = vsel %vm2891_vm8, %v2590_v13, %v2933_v20  ;;  %v2854_v56 = vrot.slane %v2218_v2, %v5094_v4 }
 0x25c   :  { %3020 = vxpose.xlu0.b32.cont [7/16] (narrow) %v2934_v7, 8 }
 0x25e   :  { %v2026_v32 = vpop.xlane.xlu1 %2025 }
 0x25f   :  { %v2023_v34 = vpop.xlane.xlu0 %2022  ;;  %v2598_v54 = vrot.slane %v2026_v32, %v5094_v4 }
 0x260   :  { %v2594_v61 = vrot.slane %v2023_v34, %v5094_v4 }
 0x262   :  { %v2032_v44 = vpop.xlane.xlu1 %2031  ;;  %v2935_v19 = vsel %vm2879_vm2, %v2598_v54, %v2594_v61 }
 0x263   :  { %v2221_v16 = vpop.xlane.xlu0 %2220  ;;  %v2606_v29 = vrot.slane %v2032_v44, %v5094_v4 }
 0x264   :  { %v2858_v48 = vrot.slane %v2221_v16, %v5094_v4 }
 0x266   :  { %v2035_v39 = vpop.xlane.xlu1 %2034 }
 0x267   :  { %v2029_v40 = vpop.xlane.xlu0 %2028  ;;  %v2610_v17 = vrot.slane %v2035_v39, %v5094_v4 }
 0x268   :  { %v2602_v21 = vrot.slane %v2029_v40, %v5094_v4 }
 0x26a   :  { %v2936_v0 = vsel %vm2881_vm3, %v2602_v21, %v2935_v19  ;;  %v2188_v8 = vpop.xlane.xlu1 %2187 }
 0x26b   :  { %v2937_v43 = vsel %vm2883_vm4, %v2606_v29, %v2936_v0  ;;  %v2038_v57 = vpop.xlane.xlu0 %2037  ;;  %v2814_v46 = vrot.slane %v2188_v8, %v5094_v4 }
 0x26c   :  { %v2938_v5 = vsel %vm2885_vm5, %v2610_v17, %v2937_v43  ;;  %v2614_v63 = vrot.slane %v2038_v57, %v5094_v4 }
 0x26e   :  { %v2939_v30 = vsel %vm2887_vm6, %v2614_v63, %v2938_v5  ;;  %v2224_v36 = vpop.xlane.xlu1 %2223 }
 0x26f   :  { %v2940_v1 = vsel %vm2889_vm7, %v2618_v6, %v2939_v30  ;;  %v2206_v38 = vpop.xlane.xlu0 %2205  ;;  %v2862_v41 = vrot.slane %v2224_v36, %v5094_v4 }
 0x270   :  { %v2941_v35 = vsel %vm2891_vm8, %v2622_v60, %v2940_v1 }
 0x271   :  { %3021 = vxpose.xlu0.b32.cont [8/16] (narrow) %v2941_v35, 8 }
 0x272   :  { %v2227_v51 = vpop.xlane.xlu1 %2226 }
 0x273   :  { %v2209_v14 = vpop.xlane.xlu0 %2208  ;;  %v2866_v23 = vrot.slane %v2227_v51, %v5094_v4 }
 0x274   :  { %v2842_v9 = vrot.slane %v2209_v14, %v5094_v4 }
 0x275   :  { %3022 = vxpose.xlu0.b32.cont [9/16] (narrow) %v5185_v24, 8  ;;  %v2850_v24 = vrot.slane %v2215_v52, %v5094_v4  ;;  %v3046_v52 = vld [vmem:[%s5622_s6] sm:$0xff]  ;;  %s4156_s6 = scalar_lea.vmem %s3068_s21, 128 }
 0x276   :  { %v2230_v11 = vpop.xlane.xlu1 %2229  ;;  %vm3047_vm9 = vcmp.ne.s32.totalorder %v3046_v52, 0  ;;  %p4157_p0 = scmp.ne.s32.totalorder %s3068_s21, %s4156_s6  ;;  %p4162_p2 = scmp.lt.s32.totalorder %s4156_s6, %s4156_s6 }
 0x277   :  { %v2212_v25 = vpop.xlane.xlu0 %2211 }
 0x278   :  { %v2846_v10 = vrot.slane %v2212_v25, %v5094_v4  ;;  %p4163_p3 = por %p4162_p2, %p4161_p1 }
 0x279   :  { %3023 = vxpose.xlu0.b32.cont [10/16] (narrow) %v5292_v47, 8  ;;  %v2830_v47 = vrot.slane %v5526_v42, %v5094_v4  ;;  %v2991_v42 = vsel %vm2879_vm2, %v2854_v56, %v2850_v24 }
 0x27a   :  { %v2992_v28 = vsel %vm2881_vm3, %v2858_v48, %v2991_v42  ;;  %v2236_v22 = vpop.xlane.xlu1 %2235  ;;  %p4164_p4 = pnand %p4163_p3, %p4157_p0 }
 0x27b   :  { %v2233_v53 = vpop.xlane.xlu0 %2232  ;;  %v2986_v45 = vsel %vm2883_vm4, %v2830_v47, %v2985_v12  ;;  %v2993_v18 = vsel %vm2883_vm4, %v2862_v41, %v2992_v28 }
 0x27c   :  { %v2874_v55 = vrot.slane %v2233_v53, %v5094_v4  ;;  %v2994_v13 = vsel %vm2885_vm5, %v2866_v23, %v2993_v18 }
 0x27d   :  { %3024 = vxpose.xlu0.b32.cont [11/16] (narrow) %v5381_v15, 8  ;;  %v2834_v15 = vrot.slane %v5529_v58, %v5094_v4  ;;  %v2870_v58 = vrot.slane %v2230_v11, %v5094_v4 }
 0x27f   :  { %v2987_v31 = vsel %vm2885_vm5, %v2834_v15, %v2986_v45  ;;  %v2995_v33 = vsel %vm2887_vm6, %v2870_v58, %v2994_v13 }
 0x280   :  { %v2996_v2 = vsel %vm2889_vm7, %v2874_v55, %v2995_v33 }
 0x281   :  { %3025 = vxpose.xlu0.b32.cont [12/16] (narrow) %v5424_v26, 8  ;;  %v2838_v26 = vrot.slane %v2206_v38, %v5094_v4 }
 0x283   :  { %v2988_v62 = vsel %vm2887_vm6, %v2838_v26, %v2987_v31 }
 0x284   :  { %v2989_v3 = vsel %vm2889_vm7, %v2842_v9, %v2988_v62 }
 0x285   :  { %3026 = vxpose.xlu0.b32.cont [13/16] (narrow) %v5475_v27, 8  ;;  %v2983_v27 = vsel %vm2891_vm8, %v2814_v46, %v5514_v49  ;;  %v2878_v49 = vrot.slane %v2236_v22, %v5094_v4  ;;  %v2990_v59 = vsel %vm2891_vm8, %v2846_v10, %v2989_v3 }
 0x287   :  { %v2997_v20 = vsel %vm2891_vm8, %v2878_v49, %v2996_v2 }
 0x289   :  { %3027 = vxpose.xlu0.b32.cont [14/16] (narrow) %v2983_v27, 8 }
 0x28d   :  { %3028 = vxpose.xlu0.b32.cont [15/16] (narrow) %v2990_v59, 8 }
 0x291   :  { %3029 = vxpose.xlu0.b32.end [16/16] (narrow) %v2997_v20, 8 }
 0x2d5   :  { %v3030_v7 = vpop.trf.xlu0 }
 0x2d6   :  { %v3048_v32 = vsel %vm3047_vm9, -1e+12, %v3030_v7 }
 0x2d7   :  { %v3050_v34 = vsel %vm3049_vm10, -inf, %v3048_v32 }
 0x2d8   :  { %3051 = vmax.xlane.f32.xlu1 %v3050_v34 }
 0x365   :  { %v3052_v4 = vpop.xlane.xlu1 %3051 }
 0x366   :  { %v3053_v44 = vsub.f32 %v3050_v34, %v3052_v4 }
 0x368   :  { %v3054_v16 = vmul.f32 1.442695, %v3053_v44 }
 0x36a   :  { %4151 = vpow2.f32 %v3054_v16 }
 0x374   :  { %v4152_v54 = vpop.eup %4151 }
 0x375   :  { %3056 = vadd.xlane.f32.xlu1 %v4152_v54 }
 0x402   :  { %v3057_v61 = vpop.xlane.xlu1 %3056 }
 0x403   :  { %4153 = vrcp.f32 %v3057_v61 }
 0x40d   :  { %v4154_v40 = vpop.eup %4153 }
 0x40e   :  { %v3059_v39 = vmul.f32 %v4154_v40, %v4152_v54 }
 0x410   :  { %3060 = vst [vmem:[#allocation2] sm:$0xff] %v3059_v39 }
 0x411   :  { %4167 = shalt.err (!%p4164_p4)
}
 0x412   :  { %s4168_s24 = scalar_lea.hbm %s5623_s7, 128 }
 0x413   :  { %p4169_p5 = scmp.ne.s32.totalorder %s5623_s7, %s4168_s24  ;;  %p4172_p6 = scmp.lt.u32.totalorder %s4168_s24, %s5623_s7 }
 0x415   :  { %p4174_p7 = pnand %p4172_p6, %p4169_p5 }
 0x417   :  { %4177 = shalt.err (!%p4174_p7)
}
 0x418   :  { %3070 = dma.vmem_to_hbm [thread:$0]  %s3068_s21, 128, %s5623_s7, [#allocation3]  }
 0x419   :  { %4178 = dma.done.wait [#allocation3], 128  }
 0x41a   :  { %4179 = vsyncadd [#allocation3], 4294967168 }
 0x41b   :  { %3074 = vsyncpa [#allocation3], 1 }

</bundles_post_ra>
